<compile_context>
chip_gen: v7x
topology: tpu7x:2x2x1
jax: 0.10.0
libtpu: 0.0.40
codegen_flags: <defaults>
</compile_context>

<pallas_src>
import functools

import numpy as np
import jax
import jax.numpy as jnp
from jax.experimental import pallas as pl
from jax.experimental.pallas import tpu as pltpu


_K1 = 32 * 3          # conv1 flattened input-row width (W * Cin)
_K1P = 128            # conv1 GEMM K padded up to one lane tile


# ---------------------------------------------------------------------------
# One-time weight preprocessing (plain numpy/JAX, outside the kernel).
# ---------------------------------------------------------------------------
def _conv_row_toeplitz(w_pt, w_in, w_out, k_pad_to=None):
    """Conv weight (Cout,Cin,4,4) -> 4 dense row-Toeplitz matrices.

    N[ki][wc*Cin + c, ow*Cout + co] = w[co, c, ki, kj] with wc = 2*ow + kj - 1
    the UNpadded input column (out-of-range taps are dropped, i.e. the conv's
    column padding is folded into N).  An unpadded input row, flattened over
    (w, c), times N[ki] yields the full flattened output row; row padding is
    handled by zero pad rows in the activation buffers.
    """
    w = np.asarray(jax.device_get(w_pt), dtype=np.float32)
    c_out, c_in, kh, kw = w.shape
    n = np.zeros((kh, w_in * c_in, w_out * c_out), np.float32)
    for ki in range(kh):
        for kj in range(kw):
            blk = w[:, :, ki, kj].T                       # (Cin, Cout)
            for ow in range(w_out):
                wc = 2 * ow + kj - 1                      # unpadded input col
                if 0 <= wc < w_in:
                    n[ki, wc * c_in:(wc + 1) * c_in,
                         ow * c_out:(ow + 1) * c_out] = blk
    if k_pad_to is not None and k_pad_to > n.shape[1]:
        n = np.pad(n, ((0, 0), (0, k_pad_to - n.shape[1]), (0, 0)))
    return jnp.asarray(n, dtype=jnp.bfloat16)


def prepare_params(params, conv_dim):
    """One-time parameter preprocessing into the kernel's layouts."""
    cd = conv_dim
    wf = 16 * cd                  # flattened output-row width of every layer
    return {
        "n1": _conv_row_toeplitz(params["w1"], 32, 16, k_pad_to=_K1P),
        "n2": _conv_row_toeplitz(params["w2"], 16, 8),    # K = 16*cd
        "n3": _conv_row_toeplitz(params["w3"], 8, 4),     # K = 16*cd
        # BN (eval) scale/shift tiled over Wo so they broadcast over the
        # flattened (ow*Cout + co) output lane layout.
        "s2": jnp.tile(params["s2"], 8).reshape(1, wf),
        "b2": jnp.tile(params["b2"], 8).reshape(1, wf),
        "s3": jnp.tile(params["s3"], 4).reshape(1, wf),
        "b3": jnp.tile(params["b3"], 4).reshape(1, wf),
        # fc weight rearranged to the conv3 output layout [oh, ow*Cout + co];
        # PyTorch's x.view flattens NCHW: flat index = co*16 + oh*4 + ow.
        "fcw": jnp.transpose(params["fc_w"].reshape(4 * cd, 4, 4),
                             (1, 2, 0)).reshape(4, wf),
        "fcb": params["fc_b"].reshape(1, 1),
    }


# ---------------------------------------------------------------------------
# The fused kernel: one grid step = BT batch elements, full forward pass.
# ---------------------------------------------------------------------------
def _discriminator_kernel(x_ref, n1_ref, n2_ref, n3_ref, s2_ref, b2_ref,
                          s3_ref, b3_ref, fcw_ref, fcb_ref, o_ref,
                          buf2, buf3, *, bt):
    # Activation layout: buf[r % 2, r // 2, b, w*C + c] holds the zero-padded
    # activation row r of local image b, flattened over (w, c) along lanes.
    wf = n2_ref.shape[-1]

    def lrelu(v):
        return jnp.where(v >= 0.0, v, 0.2 * v)

    def conv(read_rows, n_ref, h_out):
        # out[(oh,b), ow*Cout+co] = sum_ki  padded_row(2*oh+ki)[b, :] @ N[ki]
        acc = jnp.dot(read_rows(0, 0, h_out), n_ref[0],
                      preferred_element_type=jnp.float32)
        for ki in range(1, 4):
            acc = acc + jnp.dot(read_rows(ki % 2, ki // 2, h_out), n_ref[ki],
                                preferred_element_type=jnp.float32)
        return acc                                   # (h_out * bt, wf) f32

    def scatter_rows(dst, y_bf16, h_out):
        # Output row j -> zero-padded row j+1 of the next layer's buffer; each
        # write is a full lane-aligned (bt, wf) slab.
        y3d = y_bf16.reshape(h_out, bt, wf)
        for j in range(h_out):
            r = j + 1
            dst[r % 2, r // 2, :, :] = y3d[j]
        # Refresh the two pad rows every step (cheap; megacore-safe, unlike a
        # program_id()==0-only init, since scratch is per-TensorCore).
        zero = jnp.zeros((bt, wf), jnp.bfloat16)
        dst[0, 0, :, :] = zero
        dst[(h_out + 1) % 2, (h_out + 1) // 2, :, :] = zero

    def read_x(s, a, h):
        return x_ref[0, s, a:a + h, :, :].reshape(h * bt, x_ref.shape[-1])

    def reader(buf):
        return lambda s, a, h: buf[s, a:a + h, :, :].reshape(h * bt, wf)

    # conv1 (no BatchNorm) + leaky_relu                3x32x32 -> cd x16x16
    y1 = lrelu(conv(read_x, n1_ref, 16)).astype(jnp.bfloat16)
    scatter_rows(buf2, y1, 16)          # Dropout(0.2): identity in eval mode

    # conv2 + BatchNorm(eval) + leaky_relu             cd x16x16 -> 2cd x8x8
    y2 = conv(reader(buf2), n2_ref, 8)
    y2 = lrelu(y2 * s2_ref[...] + b2_ref[...]).astype(jnp.bfloat16)
    scatter_rows(buf3, y2, 8)

    # conv3 + BatchNorm(eval) + leaky_relu             2cd x8x8 -> 4cd x4x4
    y3 = conv(reader(buf3), n3_ref, 4)
    y3 = lrelu(y3 * s3_ref[...] + b3_ref[...])        # (4*bt, wf) f32

    # fc folded in: logit[b] = sum_{oh,lane} y3[oh, b, lane]*fcw[oh, lane] + b
    t = y3.reshape(4, bt, wf) * fcw_ref[...][:, None, :]
    s_bl = jnp.sum(t, axis=0)                         # (bt, wf)
    logits = jnp.sum(s_bl, axis=-1, keepdims=True)    # (bt, 1)
    o_ref[...] = (logits + fcb_ref[...])[None]        # (1, bt, 1)


def discriminator_forward(prep, x_nchw, *, conv_dim, block_batch=16):
    cd = conv_dim
    wf = 16 * cd
    bt = block_batch
    b = x_nchw.shape[0]
    ns = (b + bt - 1) // bt              # grid steps
    bp = ns * bt

    # NCHW -> NHWC, flatten (w, c) into lanes, zero-pad rows by 1, zero-pad
    # lanes up to the kernel's K, fold rows into the
    # (step, parity, row-pair, image, lane) layout used by the kernel.
    x = jnp.transpose(x_nchw, (0, 2, 3, 1)).reshape(b, 32, _K1)
    x = jnp.pad(x, ((0, bp - b), (1, 1), (0, _K1P - _K1)))       # (bp, 34, 128)
    x = x.reshape(bp, 17, 2, _K1P).transpose(0, 2, 1, 3)         # (bp, 2, 17, .)
    x = x.reshape(ns, bt, 2, 17, _K1P).transpose(0, 2, 3, 1, 4)  # (ns,2,17,bt,.)
    x = x.astype(jnp.bfloat16)

    def full(*shape):
        return pl.BlockSpec(shape, lambda i: (0,) * len(shape))

    out = pl.pallas_call(
        functools.partial(_discriminator_kernel, bt=bt),
        out_shape=jax.ShapeDtypeStruct((ns, bt, 1), jnp.float32),
        grid=(ns,),
        in_specs=[
            pl.BlockSpec((1, 2, 17, bt, _K1P), lambda i: (i, 0, 0, 0, 0)),
            full(4, _K1P, wf),               # conv1 row-Toeplitz weights
            full(4, wf, wf),                 # conv2
            full(4, wf, wf),                 # conv3
            full(1, wf), full(1, wf),        # BN2 scale / shift (tiled)
            full(1, wf), full(1, wf),        # BN3 scale / shift (tiled)
            full(4, wf),                     # fc weight (rearranged)
            full(1, 1),                      # fc bias
        ],
        out_specs=pl.BlockSpec((1, bt, 1), lambda i: (i, 0, 0)),
        scratch_shapes=[
            pltpu.VMEM((2, 9, bt, wf), jnp.bfloat16),   # conv2 in (row-padded)
            pltpu.VMEM((2, 5, bt, wf), jnp.bfloat16),   # conv3 in (row-padded)
        ],
        compiler_params=pltpu.CompilerParams(
            dimension_semantics=("parallel",)),
    )(x, prep["n1"], prep["n2"], prep["n3"], prep["s2"], prep["b2"],
      prep["s3"], prep["b3"], prep["fcw"], prep["fcb"])
    return out.reshape(bp, 1)[:b]


# ---------------------------------------------------------------------------
# Parameters + plain-XLA reference (reference used only for a numerics check).
# ---------------------------------------------------------------------------
def init_params(key, conv_dim):
    cd = conv_dim
    ks = jax.random.split(key, 13)
    eps = 1e-5

    def bn_eval_affine(kg, kb, km, kv, c):
        gamma = 1.0 + 0.1 * jax.random.normal(kg, (c,), jnp.float32)
        beta = 0.1 * jax.random.normal(kb, (c,), jnp.float32)
        mean = 0.1 * jax.random.normal(km, (c,), jnp.float32)
        var = jax.random.uniform(kv, (c,), jnp.float32, 0.5, 1.5)
        scale = gamma / jnp.sqrt(var + eps)
        shift = beta - mean * scale
        return scale, shift

    p = {}
    # Conv2d(..., bias=False) everywhere; conv1 has no BatchNorm (per spec).
    p["w1"] = 0.05 * jax.random.normal(ks[0], (cd, 3, 4, 4), jnp.float32)
    p["w2"] = 0.05 * jax.random.normal(ks[1], (2 * cd, cd, 4, 4), jnp.float32)
    p["s2"], p["b2"] = bn_eval_affine(ks[2], ks[3], ks[4], ks[5], 2 * cd)
    p["w3"] = 0.05 * jax.random.normal(ks[6], (4 * cd, 2 * cd, 4, 4),
                                       jnp.float32)
    p["s3"], p["b3"] = bn_eval_affine(ks[7], ks[8], ks[9], ks[10], 4 * cd)
    fc_in = cd * 4 * 4 * 4
    p["fc_w"] = 0.05 * jax.random.normal(ks[11], (1, fc_in), jnp.float32)
    p["fc_b"] = 0.05 * jax.random.normal(ks[12], (1,), jnp.float32)
    return p


def reference_forward(params, x_nchw):
    def conv2d(x, w):
        return jax.lax.conv_general_dilated(
            x, w, window_strides=(2, 2), padding=((1, 1), (1, 1)),
            dimension_numbers=("NCHW", "OIHW", "NCHW"),
            precision=jax.lax.Precision.HIGHEST)

    def lrelu(v):
        return jnp.where(v >= 0.0, v, 0.2 * v)

    y = lrelu(conv2d(x_nchw, params["w1"]))
    y = conv2d(y, params["w2"])
    y = lrelu(y * params["s2"][None, :, None, None]
              + params["b2"][None, :, None, None])
    y = conv2d(y, params["w3"])
    y = lrelu(y * params["s3"][None, :, None, None]
              + params["b3"][None, :, None, None])
    y = y.reshape(y.shape[0], -1)
    return y @ params["fc_w"].T + params["fc_b"][None, :]


if __name__ == "__main__":
    conv_dim = 8    # multiple of 8 keeps every fused GEMM lane-dense (wf=128)
    batch = 32      # 2 grid steps of block_batch=16 images each (megacore-able)
    key = jax.random.PRNGKey(0)
    k_param, k_x = jax.random.split(key)

    params = init_params(k_param, conv_dim)
    prep = prepare_params(params, conv_dim)
    # Spatial size must be 32x32 so that conv_dim*4 * 4*4 matches the fc.
    x = jax.random.normal(k_x, (batch, 3, 32, 32), jnp.float32)

    fwd = jax.jit(functools.partial(discriminator_forward, conv_dim=conv_dim,
                                    block_batch=16))
    out = jax.block_until_ready(fwd(prep, x))
    assert out.shape == (batch, 1), out.shape

    # Cross-check against plain XLA (bf16 MXU inputs => loose tolerance).
    ref = reference_forward(params, x)
    err = float(jnp.max(jnp.abs(out - ref)))
    assert err < 5e-2, f"kernel/reference mismatch: {err}"
    print("KERNEL_OK")
</pallas_src>

<mosaic_0001>
module attributes {stable_mosaic.version = 11 : i64} {
  func.func @_discriminator_kernel(%arg0: i32, %arg1: memref<1x2x17x16x128xbf16, #tpu.memory_space<vmem>>, %arg2: memref<4x128x128xbf16, #tpu.memory_space<vmem>>, %arg3: memref<4x128x128xbf16, #tpu.memory_space<vmem>>, %arg4: memref<4x128x128xbf16, #tpu.memory_space<vmem>>, %arg5: memref<1x128xf32, #tpu.memory_space<vmem>>, %arg6: memref<1x128xf32, #tpu.memory_space<vmem>>, %arg7: memref<1x128xf32, #tpu.memory_space<vmem>>, %arg8: memref<1x128xf32, #tpu.memory_space<vmem>>, %arg9: memref<4x128xf32, #tpu.memory_space<vmem>>, %arg10: memref<1x1xf32, #tpu.memory_space<vmem>>, %arg11: memref<1x16x1xf32, #tpu.memory_space<vmem>>, %arg12: memref<2x9x16x128xbf16, #tpu.memory_space<vmem>>, %arg13: memref<2x5x16x128xbf16, #tpu.memory_space<vmem>>) attributes {dimension_semantics = [#tpu.dimension_semantics<parallel>], iteration_bounds = array<i64: 2>, scalar_prefetch = 0 : i64, scratch_operands = 2 : i64, tpu.core_type = #tpu.core_type<tc>, window_params = [{transform_indices = @transform_0, window_bounds = array<i64: 1, 2, 17, 16, 128>}, {pipeline_mode = #tpu.pipeline_mode<synchronous>, transform_indices = @transform_1, window_bounds = array<i64: 4, 128, 128>}, {pipeline_mode = #tpu.pipeline_mode<synchronous>, transform_indices = @transform_2, window_bounds = array<i64: 4, 128, 128>}, {pipeline_mode = #tpu.pipeline_mode<synchronous>, transform_indices = @transform_3, window_bounds = array<i64: 4, 128, 128>}, {pipeline_mode = #tpu.pipeline_mode<synchronous>, transform_indices = @transform_4, window_bounds = array<i64: 1, 128>}, {pipeline_mode = #tpu.pipeline_mode<synchronous>, transform_indices = @transform_5, window_bounds = array<i64: 1, 128>}, {pipeline_mode = #tpu.pipeline_mode<synchronous>, transform_indices = @transform_6, window_bounds = array<i64: 1, 128>}, {pipeline_mode = #tpu.pipeline_mode<synchronous>, transform_indices = @transform_7, window_bounds = array<i64: 1, 128>}, {pipeline_mode = #tpu.pipeline_mode<synchronous>, transform_indices = @transform_8, window_bounds = array<i64: 4, 128>}, {pipeline_mode = #tpu.pipeline_mode<synchronous>, transform_indices = @transform_9, window_bounds = array<i64: 1, 1>}, {transform_indices = @transform_10, window_bounds = array<i64: 1, 16, 1>}]} {
    %c0 = arith.constant 0 : index
    %c0_0 = arith.constant 0 : index
    %c0_1 = arith.constant 0 : index
    %c0_2 = arith.constant 0 : index
    %c0_3 = arith.constant 0 : index
    %0 = vector.load %arg1[%c0, %c0_0, %c0_1, %c0_2, %c0_3] : memref<1x2x17x16x128xbf16, #tpu.memory_space<vmem>>, vector<1x1x16x16x128xbf16>
    %1 = vector.shape_cast %0 : vector<1x1x16x16x128xbf16> to vector<16x16x128xbf16>
    %2 = vector.shape_cast %1 : vector<16x16x128xbf16> to vector<256x128xbf16>
    %c0_4 = arith.constant 0 : index
    %c0_5 = arith.constant 0 : index
    %c0_6 = arith.constant 0 : index
    %3 = vector.load %arg2[%c0_4, %c0_5, %c0_6] : memref<4x128x128xbf16, #tpu.memory_space<vmem>>, vector<1x128x128xbf16>
    %4 = vector.shape_cast %3 : vector<1x128x128xbf16> to vector<128x128xbf16>
    %cst = arith.constant dense<0.000000e+00> : vector<256x128xf32>
    %5 = tpu.matmul %2, %4, %cst {dimension_numbers = #tpu.dot_dimension_numbers<[1], [0], [0], [1], [0, 0, 1, 1], [], []>} : vector<256x128xbf16>, vector<128x128xbf16>, vector<256x128xf32> -> vector<256x128xf32>
    %c0_7 = arith.constant 0 : index
    %c1 = arith.constant 1 : index
    %c0_8 = arith.constant 0 : index
    %c0_9 = arith.constant 0 : index
    %c0_10 = arith.constant 0 : index
    %6 = vector.load %arg1[%c0_7, %c1, %c0_8, %c0_9, %c0_10] : memref<1x2x17x16x128xbf16, #tpu.memory_space<vmem>>, vector<1x1x16x16x128xbf16>
    %7 = vector.shape_cast %6 : vector<1x1x16x16x128xbf16> to vector<16x16x128xbf16>
    %8 = vector.shape_cast %7 : vector<16x16x128xbf16> to vector<256x128xbf16>
    %c1_11 = arith.constant 1 : index
    %c0_12 = arith.constant 0 : index
    %c0_13 = arith.constant 0 : index
    %9 = vector.load %arg2[%c1_11, %c0_12, %c0_13] : memref<4x128x128xbf16, #tpu.memory_space<vmem>>, vector<1x128x128xbf16>
    %10 = vector.shape_cast %9 : vector<1x128x128xbf16> to vector<128x128xbf16>
    %cst_14 = arith.constant dense<0.000000e+00> : vector<256x128xf32>
    %11 = tpu.matmul %8, %10, %cst_14 {dimension_numbers = #tpu.dot_dimension_numbers<[1], [0], [0], [1], [0, 0, 1, 1], [], []>} : vector<256x128xbf16>, vector<128x128xbf16>, vector<256x128xf32> -> vector<256x128xf32>
    %12 = arith.addf %5, %11 : vector<256x128xf32>
    %c0_15 = arith.constant 0 : index
    %c0_16 = arith.constant 0 : index
    %c1_17 = arith.constant 1 : index
    %c0_18 = arith.constant 0 : index
    %c0_19 = arith.constant 0 : index
    %13 = vector.load %arg1[%c0_15, %c0_16, %c1_17, %c0_18, %c0_19] : memref<1x2x17x16x128xbf16, #tpu.memory_space<vmem>>, vector<1x1x16x16x128xbf16>
    %14 = vector.shape_cast %13 : vector<1x1x16x16x128xbf16> to vector<16x16x128xbf16>
    %15 = vector.shape_cast %14 : vector<16x16x128xbf16> to vector<256x128xbf16>
    %c2 = arith.constant 2 : index
    %c0_20 = arith.constant 0 : index
    %c0_21 = arith.constant 0 : index
    %16 = vector.load %arg2[%c2, %c0_20, %c0_21] : memref<4x128x128xbf16, #tpu.memory_space<vmem>>, vector<1x128x128xbf16>
    %17 = vector.shape_cast %16 : vector<1x128x128xbf16> to vector<128x128xbf16>
    %cst_22 = arith.constant dense<0.000000e+00> : vector<256x128xf32>
    %18 = tpu.matmul %15, %17, %cst_22 {dimension_numbers = #tpu.dot_dimension_numbers<[1], [0], [0], [1], [0, 0, 1, 1], [], []>} : vector<256x128xbf16>, vector<128x128xbf16>, vector<256x128xf32> -> vector<256x128xf32>
    %19 = arith.addf %12, %18 : vector<256x128xf32>
    %c0_23 = arith.constant 0 : index
    %c1_24 = arith.constant 1 : index
    %c1_25 = arith.constant 1 : index
    %c0_26 = arith.constant 0 : index
    %c0_27 = arith.constant 0 : index
    %20 = vector.load %arg1[%c0_23, %c1_24, %c1_25, %c0_26, %c0_27] : memref<1x2x17x16x128xbf16, #tpu.memory_space<vmem>>, vector<1x1x16x16x128xbf16>
    %21 = vector.shape_cast %20 : vector<1x1x16x16x128xbf16> to vector<16x16x128xbf16>
    %22 = vector.shape_cast %21 : vector<16x16x128xbf16> to vector<256x128xbf16>
    %c3 = arith.constant 3 : index
    %c0_28 = arith.constant 0 : index
    %c0_29 = arith.constant 0 : index
    %23 = vector.load %arg2[%c3, %c0_28, %c0_29] : memref<4x128x128xbf16, #tpu.memory_space<vmem>>, vector<1x128x128xbf16>
    %24 = vector.shape_cast %23 : vector<1x128x128xbf16> to vector<128x128xbf16>
    %cst_30 = arith.constant dense<0.000000e+00> : vector<256x128xf32>
    %25 = tpu.matmul %22, %24, %cst_30 {dimension_numbers = #tpu.dot_dimension_numbers<[1], [0], [0], [1], [0, 0, 1, 1], [], []>} : vector<256x128xbf16>, vector<128x128xbf16>, vector<256x128xf32> -> vector<256x128xf32>
    %26 = arith.addf %19, %25 : vector<256x128xf32>
    %cst_31 = arith.constant 0.000000e+00 : f32
    %27 = vector.broadcast %cst_31 : f32 to vector<256x128xf32>
    %28 = arith.cmpf oge, %26, %27 : vector<256x128xf32>
    %cst_32 = arith.constant 2.000000e-01 : f32
    %29 = vector.broadcast %cst_32 : f32 to vector<256x128xf32>
    %30 = arith.mulf %29, %26 : vector<256x128xf32>
    %31 = arith.select %28, %26, %30 : vector<256x128xi1>, vector<256x128xf32>
    %32 = arith.truncf %31 : vector<256x128xf32> to vector<256x128xbf16>
    %33 = vector.shape_cast %32 : vector<256x128xbf16> to vector<16x16x128xbf16>
    %34 = vector.extract_strided_slice %33 {offsets = [0, 0, 0], sizes = [1, 16, 128], strides = [1, 1, 1]} : vector<16x16x128xbf16> to vector<1x16x128xbf16>
    %35 = vector.shape_cast %34 : vector<1x16x128xbf16> to vector<16x128xbf16>
    %c1_33 = arith.constant 1 : index
    %c0_34 = arith.constant 0 : index
    %c0_35 = arith.constant 0 : index
    %c0_36 = arith.constant 0 : index
    %36 = vector.load %arg12[%c1_33, %c0_34, %c0_35, %c0_36] : memref<2x9x16x128xbf16, #tpu.memory_space<vmem>>, vector<1x1x16x128xbf16>
    %37 = vector.shape_cast %36 : vector<1x1x16x128xbf16> to vector<16x128xbf16>
    %38 = vector.shape_cast %35 : vector<16x128xbf16> to vector<1x1x16x128xbf16>
    tpu.vector_store %arg12[%c1_33, %c0_34, %c0_35, %c0_36], %38 {strides = array<i32>} : memref<2x9x16x128xbf16, #tpu.memory_space<vmem>>, vector<1x1x16x128xbf16>,
    %39 = vector.extract_strided_slice %33 {offsets = [1, 0, 0], sizes = [1, 16, 128], strides = [1, 1, 1]} : vector<16x16x128xbf16> to vector<1x16x128xbf16>
    %40 = vector.shape_cast %39 : vector<1x16x128xbf16> to vector<16x128xbf16>
    %c0_37 = arith.constant 0 : index
    %c1_38 = arith.constant 1 : index
    %c0_39 = arith.constant 0 : index
    %c0_40 = arith.constant 0 : index
    %41 = vector.load %arg12[%c0_37, %c1_38, %c0_39, %c0_40] : memref<2x9x16x128xbf16, #tpu.memory_space<vmem>>, vector<1x1x16x128xbf16>
    %42 = vector.shape_cast %41 : vector<1x1x16x128xbf16> to vector<16x128xbf16>
    %43 = vector.shape_cast %40 : vector<16x128xbf16> to vector<1x1x16x128xbf16>
    tpu.vector_store %arg12[%c0_37, %c1_38, %c0_39, %c0_40], %43 {strides = array<i32>} : memref<2x9x16x128xbf16, #tpu.memory_space<vmem>>, vector<1x1x16x128xbf16>,
    %44 = vector.extract_strided_slice %33 {offsets = [2, 0, 0], sizes = [1, 16, 128], strides = [1, 1, 1]} : vector<16x16x128xbf16> to vector<1x16x128xbf16>
    %45 = vector.shape_cast %44 : vector<1x16x128xbf16> to vector<16x128xbf16>
    %c1_41 = arith.constant 1 : index
    %c1_42 = arith.constant 1 : index
    %c0_43 = arith.constant 0 : index
    %c0_44 = arith.constant 0 : index
    %46 = vector.load %arg12[%c1_41, %c1_42, %c0_43, %c0_44] : memref<2x9x16x128xbf16, #tpu.memory_space<vmem>>, vector<1x1x16x128xbf16>
    %47 = vector.shape_cast %46 : vector<1x1x16x128xbf16> to vector<16x128xbf16>
    %48 = vector.shape_cast %45 : vector<16x128xbf16> to vector<1x1x16x128xbf16>
    tpu.vector_store %arg12[%c1_41, %c1_42, %c0_43, %c0_44], %48 {strides = array<i32>} : memref<2x9x16x128xbf16, #tpu.memory_space<vmem>>, vector<1x1x16x128xbf16>,
    %49 = vector.extract_strided_slice %33 {offsets = [3, 0, 0], sizes = [1, 16, 128], strides = [1, 1, 1]} : vector<16x16x128xbf16> to vector<1x16x128xbf16>
    %50 = vector.shape_cast %49 : vector<1x16x128xbf16> to vector<16x128xbf16>
    %c0_45 = arith.constant 0 : index
    %c2_46 = arith.constant 2 : index
    %c0_47 = arith.constant 0 : index
    %c0_48 = arith.constant 0 : index
    %51 = vector.load %arg12[%c0_45, %c2_46, %c0_47, %c0_48] : memref<2x9x16x128xbf16, #tpu.memory_space<vmem>>, vector<1x1x16x128xbf16>
    %52 = vector.shape_cast %51 : vector<1x1x16x128xbf16> to vector<16x128xbf16>
    %53 = vector.shape_cast %50 : vector<16x128xbf16> to vector<1x1x16x128xbf16>
    tpu.vector_store %arg12[%c0_45, %c2_46, %c0_47, %c0_48], %53 {strides = array<i32>} : memref<2x9x16x128xbf16, #tpu.memory_space<vmem>>, vector<1x1x16x128xbf16>,
    %54 = vector.extract_strided_slice %33 {offsets = [4, 0, 0], sizes = [1, 16, 128], strides = [1, 1, 1]} : vector<16x16x128xbf16> to vector<1x16x128xbf16>
    %55 = vector.shape_cast %54 : vector<1x16x128xbf16> to vector<16x128xbf16>
    %c1_49 = arith.constant 1 : index
    %c2_50 = arith.constant 2 : index
    %c0_51 = arith.constant 0 : index
    %c0_52 = arith.constant 0 : index
    %56 = vector.load %arg12[%c1_49, %c2_50, %c0_51, %c0_52] : memref<2x9x16x128xbf16, #tpu.memory_space<vmem>>, vector<1x1x16x128xbf16>
    %57 = vector.shape_cast %56 : vector<1x1x16x128xbf16> to vector<16x128xbf16>
    %58 = vector.shape_cast %55 : vector<16x128xbf16> to vector<1x1x16x128xbf16>
    tpu.vector_store %arg12[%c1_49, %c2_50, %c0_51, %c0_52], %58 {strides = array<i32>} : memref<2x9x16x128xbf16, #tpu.memory_space<vmem>>, vector<1x1x16x128xbf16>,
    %59 = vector.extract_strided_slice %33 {offsets = [5, 0, 0], sizes = [1, 16, 128], strides = [1, 1, 1]} : vector<16x16x128xbf16> to vector<1x16x128xbf16>
    %60 = vector.shape_cast %59 : vector<1x16x128xbf16> to vector<16x128xbf16>
    %c0_53 = arith.constant 0 : index
    %c3_54 = arith.constant 3 : index
    %c0_55 = arith.constant 0 : index
    %c0_56 = arith.constant 0 : index
    %61 = vector.load %arg12[%c0_53, %c3_54, %c0_55, %c0_56] : memref<2x9x16x128xbf16, #tpu.memory_space<vmem>>, vector<1x1x16x128xbf16>
    %62 = vector.shape_cast %61 : vector<1x1x16x128xbf16> to vector<16x128xbf16>
    %63 = vector.shape_cast %60 : vector<16x128xbf16> to vector<1x1x16x128xbf16>
    tpu.vector_store %arg12[%c0_53, %c3_54, %c0_55, %c0_56], %63 {strides = array<i32>} : memref<2x9x16x128xbf16, #tpu.memory_space<vmem>>, vector<1x1x16x128xbf16>,
    %64 = vector.extract_strided_slice %33 {offsets = [6, 0, 0], sizes = [1, 16, 128], strides = [1, 1, 1]} : vector<16x16x128xbf16> to vector<1x16x128xbf16>
    %65 = vector.shape_cast %64 : vector<1x16x128xbf16> to vector<16x128xbf16>
    %c1_57 = arith.constant 1 : index
    %c3_58 = arith.constant 3 : index
    %c0_59 = arith.constant 0 : index
    %c0_60 = arith.constant 0 : index
    %66 = vector.load %arg12[%c1_57, %c3_58, %c0_59, %c0_60] : memref<2x9x16x128xbf16, #tpu.memory_space<vmem>>, vector<1x1x16x128xbf16>
    %67 = vector.shape_cast %66 : vector<1x1x16x128xbf16> to vector<16x128xbf16>
    %68 = vector.shape_cast %65 : vector<16x128xbf16> to vector<1x1x16x128xbf16>
    tpu.vector_store %arg12[%c1_57, %c3_58, %c0_59, %c0_60], %68 {strides = array<i32>} : memref<2x9x16x128xbf16, #tpu.memory_space<vmem>>, vector<1x1x16x128xbf16>,
    %69 = vector.extract_strided_slice %33 {offsets = [7, 0, 0], sizes = [1, 16, 128], strides = [1, 1, 1]} : vector<16x16x128xbf16> to vector<1x16x128xbf16>
    %70 = vector.shape_cast %69 : vector<1x16x128xbf16> to vector<16x128xbf16>
    %c0_61 = arith.constant 0 : index
    %c4 = arith.constant 4 : index
    %c0_62 = arith.constant 0 : index
    %c0_63 = arith.constant 0 : index
    %71 = vector.load %arg12[%c0_61, %c4, %c0_62, %c0_63] : memref<2x9x16x128xbf16, #tpu.memory_space<vmem>>, vector<1x1x16x128xbf16>
    %72 = vector.shape_cast %71 : vector<1x1x16x128xbf16> to vector<16x128xbf16>
    %73 = vector.shape_cast %70 : vector<16x128xbf16> to vector<1x1x16x128xbf16>
    tpu.vector_store %arg12[%c0_61, %c4, %c0_62, %c0_63], %73 {strides = array<i32>} : memref<2x9x16x128xbf16, #tpu.memory_space<vmem>>, vector<1x1x16x128xbf16>,
    %74 = vector.extract_strided_slice %33 {offsets = [8, 0, 0], sizes = [1, 16, 128], strides = [1, 1, 1]} : vector<16x16x128xbf16> to vector<1x16x128xbf16>
    %75 = vector.shape_cast %74 : vector<1x16x128xbf16> to vector<16x128xbf16>
    %c1_64 = arith.constant 1 : index
    %c4_65 = arith.constant 4 : index
    %c0_66 = arith.constant 0 : index
    %c0_67 = arith.constant 0 : index
    %76 = vector.load %arg12[%c1_64, %c4_65, %c0_66, %c0_67] : memref<2x9x16x128xbf16, #tpu.memory_space<vmem>>, vector<1x1x16x128xbf16>
    %77 = vector.shape_cast %76 : vector<1x1x16x128xbf16> to vector<16x128xbf16>
    %78 = vector.shape_cast %75 : vector<16x128xbf16> to vector<1x1x16x128xbf16>
    tpu.vector_store %arg12[%c1_64, %c4_65, %c0_66, %c0_67], %78 {strides = array<i32>} : memref<2x9x16x128xbf16, #tpu.memory_space<vmem>>, vector<1x1x16x128xbf16>,
    %79 = vector.extract_strided_slice %33 {offsets = [9, 0, 0], sizes = [1, 16, 128], strides = [1, 1, 1]} : vector<16x16x128xbf16> to vector<1x16x128xbf16>
    %80 = vector.shape_cast %79 : vector<1x16x128xbf16> to vector<16x128xbf16>
    %c0_68 = arith.constant 0 : index
    %c5 = arith.constant 5 : index
    %c0_69 = arith.constant 0 : index
    %c0_70 = arith.constant 0 : index
    %81 = vector.load %arg12[%c0_68, %c5, %c0_69, %c0_70] : memref<2x9x16x128xbf16, #tpu.memory_space<vmem>>, vector<1x1x16x128xbf16>
    %82 = vector.shape_cast %81 : vector<1x1x16x128xbf16> to vector<16x128xbf16>
    %83 = vector.shape_cast %80 : vector<16x128xbf16> to vector<1x1x16x128xbf16>
    tpu.vector_store %arg12[%c0_68, %c5, %c0_69, %c0_70], %83 {strides = array<i32>} : memref<2x9x16x128xbf16, #tpu.memory_space<vmem>>, vector<1x1x16x128xbf16>,
    %84 = vector.extract_strided_slice %33 {offsets = [10, 0, 0], sizes = [1, 16, 128], strides = [1, 1, 1]} : vector<16x16x128xbf16> to vector<1x16x128xbf16>
    %85 = vector.shape_cast %84 : vector<1x16x128xbf16> to vector<16x128xbf16>
    %c1_71 = arith.constant 1 : index
    %c5_72 = arith.constant 5 : index
    %c0_73 = arith.constant 0 : index
    %c0_74 = arith.constant 0 : index
    %86 = vector.load %arg12[%c1_71, %c5_72, %c0_73, %c0_74] : memref<2x9x16x128xbf16, #tpu.memory_space<vmem>>, vector<1x1x16x128xbf16>
    %87 = vector.shape_cast %86 : vector<1x1x16x128xbf16> to vector<16x128xbf16>
    %88 = vector.shape_cast %85 : vector<16x128xbf16> to vector<1x1x16x128xbf16>
    tpu.vector_store %arg12[%c1_71, %c5_72, %c0_73, %c0_74], %88 {strides = array<i32>} : memref<2x9x16x128xbf16, #tpu.memory_space<vmem>>, vector<1x1x16x128xbf16>,
    %89 = vector.extract_strided_slice %33 {offsets = [11, 0, 0], sizes = [1, 16, 128], strides = [1, 1, 1]} : vector<16x16x128xbf16> to vector<1x16x128xbf16>
    %90 = vector.shape_cast %89 : vector<1x16x128xbf16> to vector<16x128xbf16>
    %c0_75 = arith.constant 0 : index
    %c6 = arith.constant 6 : index
    %c0_76 = arith.constant 0 : index
    %c0_77 = arith.constant 0 : index
    %91 = vector.load %arg12[%c0_75, %c6, %c0_76, %c0_77] : memref<2x9x16x128xbf16, #tpu.memory_space<vmem>>, vector<1x1x16x128xbf16>
    %92 = vector.shape_cast %91 : vector<1x1x16x128xbf16> to vector<16x128xbf16>
    %93 = vector.shape_cast %90 : vector<16x128xbf16> to vector<1x1x16x128xbf16>
    tpu.vector_store %arg12[%c0_75, %c6, %c0_76, %c0_77], %93 {strides = array<i32>} : memref<2x9x16x128xbf16, #tpu.memory_space<vmem>>, vector<1x1x16x128xbf16>,
    %94 = vector.extract_strided_slice %33 {offsets = [12, 0, 0], sizes = [1, 16, 128], strides = [1, 1, 1]} : vector<16x16x128xbf16> to vector<1x16x128xbf16>
    %95 = vector.shape_cast %94 : vector<1x16x128xbf16> to vector<16x128xbf16>
    %c1_78 = arith.constant 1 : index
    %c6_79 = arith.constant 6 : index
    %c0_80 = arith.constant 0 : index
    %c0_81 = arith.constant 0 : index
    %96 = vector.load %arg12[%c1_78, %c6_79, %c0_80, %c0_81] : memref<2x9x16x128xbf16, #tpu.memory_space<vmem>>, vector<1x1x16x128xbf16>
    %97 = vector.shape_cast %96 : vector<1x1x16x128xbf16> to vector<16x128xbf16>
    %98 = vector.shape_cast %95 : vector<16x128xbf16> to vector<1x1x16x128xbf16>
    tpu.vector_store %arg12[%c1_78, %c6_79, %c0_80, %c0_81], %98 {strides = array<i32>} : memref<2x9x16x128xbf16, #tpu.memory_space<vmem>>, vector<1x1x16x128xbf16>,
    %99 = vector.extract_strided_slice %33 {offsets = [13, 0, 0], sizes = [1, 16, 128], strides = [1, 1, 1]} : vector<16x16x128xbf16> to vector<1x16x128xbf16>
    %100 = vector.shape_cast %99 : vector<1x16x128xbf16> to vector<16x128xbf16>
    %c0_82 = arith.constant 0 : index
    %c7 = arith.constant 7 : index
    %c0_83 = arith.constant 0 : index
    %c0_84 = arith.constant 0 : index
    %101 = vector.load %arg12[%c0_82, %c7, %c0_83, %c0_84] : memref<2x9x16x128xbf16, #tpu.memory_space<vmem>>, vector<1x1x16x128xbf16>
    %102 = vector.shape_cast %101 : vector<1x1x16x128xbf16> to vector<16x128xbf16>
    %103 = vector.shape_cast %100 : vector<16x128xbf16> to vector<1x1x16x128xbf16>
    tpu.vector_store %arg12[%c0_82, %c7, %c0_83, %c0_84], %103 {strides = array<i32>} : memref<2x9x16x128xbf16, #tpu.memory_space<vmem>>, vector<1x1x16x128xbf16>,
    %104 = vector.extract_strided_slice %33 {offsets = [14, 0, 0], sizes = [1, 16, 128], strides = [1, 1, 1]} : vector<16x16x128xbf16> to vector<1x16x128xbf16>
    %105 = vector.shape_cast %104 : vector<1x16x128xbf16> to vector<16x128xbf16>
    %c1_85 = arith.constant 1 : index
    %c7_86 = arith.constant 7 : index
    %c0_87 = arith.constant 0 : index
    %c0_88 = arith.constant 0 : index
    %106 = vector.load %arg12[%c1_85, %c7_86, %c0_87, %c0_88] : memref<2x9x16x128xbf16, #tpu.memory_space<vmem>>, vector<1x1x16x128xbf16>
    %107 = vector.shape_cast %106 : vector<1x1x16x128xbf16> to vector<16x128xbf16>
    %108 = vector.shape_cast %105 : vector<16x128xbf16> to vector<1x1x16x128xbf16>
    tpu.vector_store %arg12[%c1_85, %c7_86, %c0_87, %c0_88], %108 {strides = array<i32>} : memref<2x9x16x128xbf16, #tpu.memory_space<vmem>>, vector<1x1x16x128xbf16>,
    %109 = vector.extract_strided_slice %33 {offsets = [15, 0, 0], sizes = [1, 16, 128], strides = [1, 1, 1]} : vector<16x16x128xbf16> to vector<1x16x128xbf16>
    %110 = vector.shape_cast %109 : vector<1x16x128xbf16> to vector<16x128xbf16>
    %c0_89 = arith.constant 0 : index
    %c8 = arith.constant 8 : index
    %c0_90 = arith.constant 0 : index
    %c0_91 = arith.constant 0 : index
    %111 = vector.load %arg12[%c0_89, %c8, %c0_90, %c0_91] : memref<2x9x16x128xbf16, #tpu.memory_space<vmem>>, vector<1x1x16x128xbf16>
    %112 = vector.shape_cast %111 : vector<1x1x16x128xbf16> to vector<16x128xbf16>
    %113 = vector.shape_cast %110 : vector<16x128xbf16> to vector<1x1x16x128xbf16>
    tpu.vector_store %arg12[%c0_89, %c8, %c0_90, %c0_91], %113 {strides = array<i32>} : memref<2x9x16x128xbf16, #tpu.memory_space<vmem>>, vector<1x1x16x128xbf16>,
    %cst_92 = arith.constant 0.000000e+00 : bf16
    %114 = vector.broadcast %cst_92 : bf16 to vector<16x128xbf16>
    %c0_93 = arith.constant 0 : index
    %c0_94 = arith.constant 0 : index
    %c0_95 = arith.constant 0 : index
    %c0_96 = arith.constant 0 : index
    %115 = vector.load %arg12[%c0_93, %c0_94, %c0_95, %c0_96] : memref<2x9x16x128xbf16, #tpu.memory_space<vmem>>, vector<1x1x16x128xbf16>
    %116 = vector.shape_cast %115 : vector<1x1x16x128xbf16> to vector<16x128xbf16>
    %117 = vector.shape_cast %114 : vector<16x128xbf16> to vector<1x1x16x128xbf16>
    tpu.vector_store %arg12[%c0_93, %c0_94, %c0_95, %c0_96], %117 {strides = array<i32>} : memref<2x9x16x128xbf16, #tpu.memory_space<vmem>>, vector<1x1x16x128xbf16>,
    %c1_97 = arith.constant 1 : index
    %c8_98 = arith.constant 8 : index
    %c0_99 = arith.constant 0 : index
    %c0_100 = arith.constant 0 : index
    %118 = vector.load %arg12[%c1_97, %c8_98, %c0_99, %c0_100] : memref<2x9x16x128xbf16, #tpu.memory_space<vmem>>, vector<1x1x16x128xbf16>
    %119 = vector.shape_cast %118 : vector<1x1x16x128xbf16> to vector<16x128xbf16>
    %120 = vector.shape_cast %114 : vector<16x128xbf16> to vector<1x1x16x128xbf16>
    tpu.vector_store %arg12[%c1_97, %c8_98, %c0_99, %c0_100], %120 {strides = array<i32>} : memref<2x9x16x128xbf16, #tpu.memory_space<vmem>>, vector<1x1x16x128xbf16>,
    %c0_101 = arith.constant 0 : index
    %c0_102 = arith.constant 0 : index
    %c0_103 = arith.constant 0 : index
    %c0_104 = arith.constant 0 : index
    %121 = vector.load %arg12[%c0_101, %c0_102, %c0_103, %c0_104] : memref<2x9x16x128xbf16, #tpu.memory_space<vmem>>, vector<1x8x16x128xbf16>
    %122 = vector.shape_cast %121 : vector<1x8x16x128xbf16> to vector<8x16x128xbf16>
    %123 = vector.shape_cast %122 : vector<8x16x128xbf16> to vector<128x128xbf16>
    %c0_105 = arith.constant 0 : index
    %c0_106 = arith.constant 0 : index
    %c0_107 = arith.constant 0 : index
    %124 = vector.load %arg3[%c0_105, %c0_106, %c0_107] : memref<4x128x128xbf16, #tpu.memory_space<vmem>>, vector<1x128x128xbf16>
    %125 = vector.shape_cast %124 : vector<1x128x128xbf16> to vector<128x128xbf16>
    %cst_108 = arith.constant dense<0.000000e+00> : vector<128x128xf32>
    %126 = tpu.matmul %123, %125, %cst_108 {dimension_numbers = #tpu.dot_dimension_numbers<[1], [0], [0], [1], [0, 0, 1, 1], [], []>} : vector<128x128xbf16>, vector<128x128xbf16>, vector<128x128xf32> -> vector<128x128xf32>
    %c1_109 = arith.constant 1 : index
    %c0_110 = arith.constant 0 : index
    %c0_111 = arith.constant 0 : index
    %c0_112 = arith.constant 0 : index
    %127 = vector.load %arg12[%c1_109, %c0_110, %c0_111, %c0_112] : memref<2x9x16x128xbf16, #tpu.memory_space<vmem>>, vector<1x8x16x128xbf16>
    %128 = vector.shape_cast %127 : vector<1x8x16x128xbf16> to vector<8x16x128xbf16>
    %129 = vector.shape_cast %128 : vector<8x16x128xbf16> to vector<128x128xbf16>
    %c1_113 = arith.constant 1 : index
    %c0_114 = arith.constant 0 : index
    %c0_115 = arith.constant 0 : index
    %130 = vector.load %arg3[%c1_113, %c0_114, %c0_115] : memref<4x128x128xbf16, #tpu.memory_space<vmem>>, vector<1x128x128xbf16>
    %131 = vector.shape_cast %130 : vector<1x128x128xbf16> to vector<128x128xbf16>
    %cst_116 = arith.constant dense<0.000000e+00> : vector<128x128xf32>
    %132 = tpu.matmul %129, %131, %cst_116 {dimension_numbers = #tpu.dot_dimension_numbers<[1], [0], [0], [1], [0, 0, 1, 1], [], []>} : vector<128x128xbf16>, vector<128x128xbf16>, vector<128x128xf32> -> vector<128x128xf32>
    %133 = arith.addf %126, %132 : vector<128x128xf32>
    %c0_117 = arith.constant 0 : index
    %c1_118 = arith.constant 1 : index
    %c0_119 = arith.constant 0 : index
    %c0_120 = arith.constant 0 : index
    %134 = vector.load %arg12[%c0_117, %c1_118, %c0_119, %c0_120] : memref<2x9x16x128xbf16, #tpu.memory_space<vmem>>, vector<1x8x16x128xbf16>
    %135 = vector.shape_cast %134 : vector<1x8x16x128xbf16> to vector<8x16x128xbf16>
    %136 = vector.shape_cast %135 : vector<8x16x128xbf16> to vector<128x128xbf16>
    %c2_121 = arith.constant 2 : index
    %c0_122 = arith.constant 0 : index
    %c0_123 = arith.constant 0 : index
    %137 = vector.load %arg3[%c2_121, %c0_122, %c0_123] : memref<4x128x128xbf16, #tpu.memory_space<vmem>>, vector<1x128x128xbf16>
    %138 = vector.shape_cast %137 : vector<1x128x128xbf16> to vector<128x128xbf16>
    %cst_124 = arith.constant dense<0.000000e+00> : vector<128x128xf32>
    %139 = tpu.matmul %136, %138, %cst_124 {dimension_numbers = #tpu.dot_dimension_numbers<[1], [0], [0], [1], [0, 0, 1, 1], [], []>} : vector<128x128xbf16>, vector<128x128xbf16>, vector<128x128xf32> -> vector<128x128xf32>
    %140 = arith.addf %133, %139 : vector<128x128xf32>
    %c1_125 = arith.constant 1 : index
    %c1_126 = arith.constant 1 : index
    %c0_127 = arith.constant 0 : index
    %c0_128 = arith.constant 0 : index
    %141 = vector.load %arg12[%c1_125, %c1_126, %c0_127, %c0_128] : memref<2x9x16x128xbf16, #tpu.memory_space<vmem>>, vector<1x8x16x128xbf16>
    %142 = vector.shape_cast %141 : vector<1x8x16x128xbf16> to vector<8x16x128xbf16>
    %143 = vector.shape_cast %142 : vector<8x16x128xbf16> to vector<128x128xbf16>
    %c3_129 = arith.constant 3 : index
    %c0_130 = arith.constant 0 : index
    %c0_131 = arith.constant 0 : index
    %144 = vector.load %arg3[%c3_129, %c0_130, %c0_131] : memref<4x128x128xbf16, #tpu.memory_space<vmem>>, vector<1x128x128xbf16>
    %145 = vector.shape_cast %144 : vector<1x128x128xbf16> to vector<128x128xbf16>
    %cst_132 = arith.constant dense<0.000000e+00> : vector<128x128xf32>
    %146 = tpu.matmul %143, %145, %cst_132 {dimension_numbers = #tpu.dot_dimension_numbers<[1], [0], [0], [1], [0, 0, 1, 1], [], []>} : vector<128x128xbf16>, vector<128x128xbf16>, vector<128x128xf32> -> vector<128x128xf32>
    %147 = arith.addf %140, %146 : vector<128x128xf32>
    %c0_133 = arith.constant 0 : index
    %c0_134 = arith.constant 0 : index
    %148 = vector.load %arg5[%c0_133, %c0_134] : memref<1x128xf32, #tpu.memory_space<vmem>>, vector<1x128xf32>
    %149 = vector.broadcast %148 : vector<1x128xf32> to vector<128x128xf32>
    %150 = arith.mulf %147, %149 : vector<128x128xf32>
    %c0_135 = arith.constant 0 : index
    %c0_136 = arith.constant 0 : index
    %151 = vector.load %arg6[%c0_135, %c0_136] : memref<1x128xf32, #tpu.memory_space<vmem>>, vector<1x128xf32>
    %152 = vector.broadcast %151 : vector<1x128xf32> to vector<128x128xf32>
    %153 = arith.addf %150, %152 : vector<128x128xf32>
    %cst_137 = arith.constant 0.000000e+00 : f32
    %154 = vector.broadcast %cst_137 : f32 to vector<128x128xf32>
    %155 = arith.cmpf oge, %153, %154 : vector<128x128xf32>
    %cst_138 = arith.constant 2.000000e-01 : f32
    %156 = vector.broadcast %cst_138 : f32 to vector<128x128xf32>
    %157 = arith.mulf %156, %153 : vector<128x128xf32>
    %158 = arith.select %155, %153, %157 : vector<128x128xi1>, vector<128x128xf32>
    %159 = arith.truncf %158 : vector<128x128xf32> to vector<128x128xbf16>
    %160 = vector.shape_cast %159 : vector<128x128xbf16> to vector<8x16x128xbf16>
    %161 = vector.extract_strided_slice %160 {offsets = [0, 0, 0], sizes = [1, 16, 128], strides = [1, 1, 1]} : vector<8x16x128xbf16> to vector<1x16x128xbf16>
    %162 = vector.shape_cast %161 : vector<1x16x128xbf16> to vector<16x128xbf16>
    %c1_139 = arith.constant 1 : index
    %c0_140 = arith.constant 0 : index
    %c0_141 = arith.constant 0 : index
    %c0_142 = arith.constant 0 : index
    %163 = vector.load %arg13[%c1_139, %c0_140, %c0_141, %c0_142] : memref<2x5x16x128xbf16, #tpu.memory_space<vmem>>, vector<1x1x16x128xbf16>
    %164 = vector.shape_cast %163 : vector<1x1x16x128xbf16> to vector<16x128xbf16>
    %165 = vector.shape_cast %162 : vector<16x128xbf16> to vector<1x1x16x128xbf16>
    tpu.vector_store %arg13[%c1_139, %c0_140, %c0_141, %c0_142], %165 {strides = array<i32>} : memref<2x5x16x128xbf16, #tpu.memory_space<vmem>>, vector<1x1x16x128xbf16>,
    %166 = vector.extract_strided_slice %160 {offsets = [1, 0, 0], sizes = [1, 16, 128], strides = [1, 1, 1]} : vector<8x16x128xbf16> to vector<1x16x128xbf16>
    %167 = vector.shape_cast %166 : vector<1x16x128xbf16> to vector<16x128xbf16>
    %c0_143 = arith.constant 0 : index
    %c1_144 = arith.constant 1 : index
    %c0_145 = arith.constant 0 : index
    %c0_146 = arith.constant 0 : index
    %168 = vector.load %arg13[%c0_143, %c1_144, %c0_145, %c0_146] : memref<2x5x16x128xbf16, #tpu.memory_space<vmem>>, vector<1x1x16x128xbf16>
    %169 = vector.shape_cast %168 : vector<1x1x16x128xbf16> to vector<16x128xbf16>
    %170 = vector.shape_cast %167 : vector<16x128xbf16> to vector<1x1x16x128xbf16>
    tpu.vector_store %arg13[%c0_143, %c1_144, %c0_145, %c0_146], %170 {strides = array<i32>} : memref<2x5x16x128xbf16, #tpu.memory_space<vmem>>, vector<1x1x16x128xbf16>,
    %171 = vector.extract_strided_slice %160 {offsets = [2, 0, 0], sizes = [1, 16, 128], strides = [1, 1, 1]} : vector<8x16x128xbf16> to vector<1x16x128xbf16>
    %172 = vector.shape_cast %171 : vector<1x16x128xbf16> to vector<16x128xbf16>
    %c1_147 = arith.constant 1 : index
    %c1_148 = arith.constant 1 : index
    %c0_149 = arith.constant 0 : index
    %c0_150 = arith.constant 0 : index
    %173 = vector.load %arg13[%c1_147, %c1_148, %c0_149, %c0_150] : memref<2x5x16x128xbf16, #tpu.memory_space<vmem>>, vector<1x1x16x128xbf16>
    %174 = vector.shape_cast %173 : vector<1x1x16x128xbf16> to vector<16x128xbf16>
    %175 = vector.shape_cast %172 : vector<16x128xbf16> to vector<1x1x16x128xbf16>
    tpu.vector_store %arg13[%c1_147, %c1_148, %c0_149, %c0_150], %175 {strides = array<i32>} : memref<2x5x16x128xbf16, #tpu.memory_space<vmem>>, vector<1x1x16x128xbf16>,
    %176 = vector.extract_strided_slice %160 {offsets = [3, 0, 0], sizes = [1, 16, 128], strides = [1, 1, 1]} : vector<8x16x128xbf16> to vector<1x16x128xbf16>
    %177 = vector.shape_cast %176 : vector<1x16x128xbf16> to vector<16x128xbf16>
    %c0_151 = arith.constant 0 : index
    %c2_152 = arith.constant 2 : index
    %c0_153 = arith.constant 0 : index
    %c0_154 = arith.constant 0 : index
    %178 = vector.load %arg13[%c0_151, %c2_152, %c0_153, %c0_154] : memref<2x5x16x128xbf16, #tpu.memory_space<vmem>>, vector<1x1x16x128xbf16>
    %179 = vector.shape_cast %178 : vector<1x1x16x128xbf16> to vector<16x128xbf16>
    %180 = vector.shape_cast %177 : vector<16x128xbf16> to vector<1x1x16x128xbf16>
    tpu.vector_store %arg13[%c0_151, %c2_152, %c0_153, %c0_154], %180 {strides = array<i32>} : memref<2x5x16x128xbf16, #tpu.memory_space<vmem>>, vector<1x1x16x128xbf16>,
    %181 = vector.extract_strided_slice %160 {offsets = [4, 0, 0], sizes = [1, 16, 128], strides = [1, 1, 1]} : vector<8x16x128xbf16> to vector<1x16x128xbf16>
    %182 = vector.shape_cast %181 : vector<1x16x128xbf16> to vector<16x128xbf16>
    %c1_155 = arith.constant 1 : index
    %c2_156 = arith.constant 2 : index
    %c0_157 = arith.constant 0 : index
    %c0_158 = arith.constant 0 : index
    %183 = vector.load %arg13[%c1_155, %c2_156, %c0_157, %c0_158] : memref<2x5x16x128xbf16, #tpu.memory_space<vmem>>, vector<1x1x16x128xbf16>
    %184 = vector.shape_cast %183 : vector<1x1x16x128xbf16> to vector<16x128xbf16>
    %185 = vector.shape_cast %182 : vector<16x128xbf16> to vector<1x1x16x128xbf16>
    tpu.vector_store %arg13[%c1_155, %c2_156, %c0_157, %c0_158], %185 {strides = array<i32>} : memref<2x5x16x128xbf16, #tpu.memory_space<vmem>>, vector<1x1x16x128xbf16>,
    %186 = vector.extract_strided_slice %160 {offsets = [5, 0, 0], sizes = [1, 16, 128], strides = [1, 1, 1]} : vector<8x16x128xbf16> to vector<1x16x128xbf16>
    %187 = vector.shape_cast %186 : vector<1x16x128xbf16> to vector<16x128xbf16>
    %c0_159 = arith.constant 0 : index
    %c3_160 = arith.constant 3 : index
    %c0_161 = arith.constant 0 : index
    %c0_162 = arith.constant 0 : index
    %188 = vector.load %arg13[%c0_159, %c3_160, %c0_161, %c0_162] : memref<2x5x16x128xbf16, #tpu.memory_space<vmem>>, vector<1x1x16x128xbf16>
    %189 = vector.shape_cast %188 : vector<1x1x16x128xbf16> to vector<16x128xbf16>
    %190 = vector.shape_cast %187 : vector<16x128xbf16> to vector<1x1x16x128xbf16>
    tpu.vector_store %arg13[%c0_159, %c3_160, %c0_161, %c0_162], %190 {strides = array<i32>} : memref<2x5x16x128xbf16, #tpu.memory_space<vmem>>, vector<1x1x16x128xbf16>,
    %191 = vector.extract_strided_slice %160 {offsets = [6, 0, 0], sizes = [1, 16, 128], strides = [1, 1, 1]} : vector<8x16x128xbf16> to vector<1x16x128xbf16>
    %192 = vector.shape_cast %191 : vector<1x16x128xbf16> to vector<16x128xbf16>
    %c1_163 = arith.constant 1 : index
    %c3_164 = arith.constant 3 : index
    %c0_165 = arith.constant 0 : index
    %c0_166 = arith.constant 0 : index
    %193 = vector.load %arg13[%c1_163, %c3_164, %c0_165, %c0_166] : memref<2x5x16x128xbf16, #tpu.memory_space<vmem>>, vector<1x1x16x128xbf16>
    %194 = vector.shape_cast %193 : vector<1x1x16x128xbf16> to vector<16x128xbf16>
    %195 = vector.shape_cast %192 : vector<16x128xbf16> to vector<1x1x16x128xbf16>
    tpu.vector_store %arg13[%c1_163, %c3_164, %c0_165, %c0_166], %195 {strides = array<i32>} : memref<2x5x16x128xbf16, #tpu.memory_space<vmem>>, vector<1x1x16x128xbf16>,
    %196 = vector.extract_strided_slice %160 {offsets = [7, 0, 0], sizes = [1, 16, 128], strides = [1, 1, 1]} : vector<8x16x128xbf16> to vector<1x16x128xbf16>
    %197 = vector.shape_cast %196 : vector<1x16x128xbf16> to vector<16x128xbf16>
    %c0_167 = arith.constant 0 : index
    %c4_168 = arith.constant 4 : index
    %c0_169 = arith.constant 0 : index
    %c0_170 = arith.constant 0 : index
    %198 = vector.load %arg13[%c0_167, %c4_168, %c0_169, %c0_170] : memref<2x5x16x128xbf16, #tpu.memory_space<vmem>>, vector<1x1x16x128xbf16>
    %199 = vector.shape_cast %198 : vector<1x1x16x128xbf16> to vector<16x128xbf16>
    %200 = vector.shape_cast %197 : vector<16x128xbf16> to vector<1x1x16x128xbf16>
    tpu.vector_store %arg13[%c0_167, %c4_168, %c0_169, %c0_170], %200 {strides = array<i32>} : memref<2x5x16x128xbf16, #tpu.memory_space<vmem>>, vector<1x1x16x128xbf16>,
    %cst_171 = arith.constant 0.000000e+00 : bf16
    %201 = vector.broadcast %cst_171 : bf16 to vector<16x128xbf16>
    %c0_172 = arith.constant 0 : index
    %c0_173 = arith.constant 0 : index
    %c0_174 = arith.constant 0 : index
    %c0_175 = arith.constant 0 : index
    %202 = vector.load %arg13[%c0_172, %c0_173, %c0_174, %c0_175] : memref<2x5x16x128xbf16, #tpu.memory_space<vmem>>, vector<1x1x16x128xbf16>
    %203 = vector.shape_cast %202 : vector<1x1x16x128xbf16> to vector<16x128xbf16>
    %204 = vector.shape_cast %201 : vector<16x128xbf16> to vector<1x1x16x128xbf16>
    tpu.vector_store %arg13[%c0_172, %c0_173, %c0_174, %c0_175], %204 {strides = array<i32>} : memref<2x5x16x128xbf16, #tpu.memory_space<vmem>>, vector<1x1x16x128xbf16>,
    %c1_176 = arith.constant 1 : index
    %c4_177 = arith.constant 4 : index
    %c0_178 = arith.constant 0 : index
    %c0_179 = arith.constant 0 : index
    %205 = vector.load %arg13[%c1_176, %c4_177, %c0_178, %c0_179] : memref<2x5x16x128xbf16, #tpu.memory_space<vmem>>, vector<1x1x16x128xbf16>
    %206 = vector.shape_cast %205 : vector<1x1x16x128xbf16> to vector<16x128xbf16>
    %207 = vector.shape_cast %201 : vector<16x128xbf16> to vector<1x1x16x128xbf16>
    tpu.vector_store %arg13[%c1_176, %c4_177, %c0_178, %c0_179], %207 {strides = array<i32>} : memref<2x5x16x128xbf16, #tpu.memory_space<vmem>>, vector<1x1x16x128xbf16>,
    %c0_180 = arith.constant 0 : index
    %c0_181 = arith.constant 0 : index
    %c0_182 = arith.constant 0 : index
    %c0_183 = arith.constant 0 : index
    %208 = vector.load %arg13[%c0_180, %c0_181, %c0_182, %c0_183] : memref<2x5x16x128xbf16, #tpu.memory_space<vmem>>, vector<1x4x16x128xbf16>
    %209 = vector.shape_cast %208 : vector<1x4x16x128xbf16> to vector<4x16x128xbf16>
    %210 = vector.shape_cast %209 : vector<4x16x128xbf16> to vector<64x128xbf16>
    %c0_184 = arith.constant 0 : index
    %c0_185 = arith.constant 0 : index
    %c0_186 = arith.constant 0 : index
    %211 = vector.load %arg4[%c0_184, %c0_185, %c0_186] : memref<4x128x128xbf16, #tpu.memory_space<vmem>>, vector<1x128x128xbf16>
    %212 = vector.shape_cast %211 : vector<1x128x128xbf16> to vector<128x128xbf16>
    %cst_187 = arith.constant dense<0.000000e+00> : vector<64x128xf32>
    %213 = tpu.matmul %210, %212, %cst_187 {dimension_numbers = #tpu.dot_dimension_numbers<[1], [0], [0], [1], [0, 0, 1, 1], [], []>} : vector<64x128xbf16>, vector<128x128xbf16>, vector<64x128xf32> -> vector<64x128xf32>
    %c1_188 = arith.constant 1 : index
    %c0_189 = arith.constant 0 : index
    %c0_190 = arith.constant 0 : index
    %c0_191 = arith.constant 0 : index
    %214 = vector.load %arg13[%c1_188, %c0_189, %c0_190, %c0_191] : memref<2x5x16x128xbf16, #tpu.memory_space<vmem>>, vector<1x4x16x128xbf16>
    %215 = vector.shape_cast %214 : vector<1x4x16x128xbf16> to vector<4x16x128xbf16>
    %216 = vector.shape_cast %215 : vector<4x16x128xbf16> to vector<64x128xbf16>
    %c1_192 = arith.constant 1 : index
    %c0_193 = arith.constant 0 : index
    %c0_194 = arith.constant 0 : index
    %217 = vector.load %arg4[%c1_192, %c0_193, %c0_194] : memref<4x128x128xbf16, #tpu.memory_space<vmem>>, vector<1x128x128xbf16>
    %218 = vector.shape_cast %217 : vector<1x128x128xbf16> to vector<128x128xbf16>
    %cst_195 = arith.constant dense<0.000000e+00> : vector<64x128xf32>
    %219 = tpu.matmul %216, %218, %cst_195 {dimension_numbers = #tpu.dot_dimension_numbers<[1], [0], [0], [1], [0, 0, 1, 1], [], []>} : vector<64x128xbf16>, vector<128x128xbf16>, vector<64x128xf32> -> vector<64x128xf32>
    %220 = arith.addf %213, %219 : vector<64x128xf32>
    %c0_196 = arith.constant 0 : index
    %c1_197 = arith.constant 1 : index
    %c0_198 = arith.constant 0 : index
    %c0_199 = arith.constant 0 : index
    %221 = vector.load %arg13[%c0_196, %c1_197, %c0_198, %c0_199] : memref<2x5x16x128xbf16, #tpu.memory_space<vmem>>, vector<1x4x16x128xbf16>
    %222 = vector.shape_cast %221 : vector<1x4x16x128xbf16> to vector<4x16x128xbf16>
    %223 = vector.shape_cast %222 : vector<4x16x128xbf16> to vector<64x128xbf16>
    %c2_200 = arith.constant 2 : index
    %c0_201 = arith.constant 0 : index
    %c0_202 = arith.constant 0 : index
    %224 = vector.load %arg4[%c2_200, %c0_201, %c0_202] : memref<4x128x128xbf16, #tpu.memory_space<vmem>>, vector<1x128x128xbf16>
    %225 = vector.shape_cast %224 : vector<1x128x128xbf16> to vector<128x128xbf16>
    %cst_203 = arith.constant dense<0.000000e+00> : vector<64x128xf32>
    %226 = tpu.matmul %223, %225, %cst_203 {dimension_numbers = #tpu.dot_dimension_numbers<[1], [0], [0], [1], [0, 0, 1, 1], [], []>} : vector<64x128xbf16>, vector<128x128xbf16>, vector<64x128xf32> -> vector<64x128xf32>
    %227 = arith.addf %220, %226 : vector<64x128xf32>
    %c1_204 = arith.constant 1 : index
    %c1_205 = arith.constant 1 : index
    %c0_206 = arith.constant 0 : index
    %c0_207 = arith.constant 0 : index
    %228 = vector.load %arg13[%c1_204, %c1_205, %c0_206, %c0_207] : memref<2x5x16x128xbf16, #tpu.memory_space<vmem>>, vector<1x4x16x128xbf16>
    %229 = vector.shape_cast %228 : vector<1x4x16x128xbf16> to vector<4x16x128xbf16>
    %230 = vector.shape_cast %229 : vector<4x16x128xbf16> to vector<64x128xbf16>
    %c3_208 = arith.constant 3 : index
    %c0_209 = arith.constant 0 : index
    %c0_210 = arith.constant 0 : index
    %231 = vector.load %arg4[%c3_208, %c0_209, %c0_210] : memref<4x128x128xbf16, #tpu.memory_space<vmem>>, vector<1x128x128xbf16>
    %232 = vector.shape_cast %231 : vector<1x128x128xbf16> to vector<128x128xbf16>
    %cst_211 = arith.constant dense<0.000000e+00> : vector<64x128xf32>
    %233 = tpu.matmul %230, %232, %cst_211 {dimension_numbers = #tpu.dot_dimension_numbers<[1], [0], [0], [1], [0, 0, 1, 1], [], []>} : vector<64x128xbf16>, vector<128x128xbf16>, vector<64x128xf32> -> vector<64x128xf32>
    %234 = arith.addf %227, %233 : vector<64x128xf32>
    %c0_212 = arith.constant 0 : index
    %c0_213 = arith.constant 0 : index
    %235 = vector.load %arg7[%c0_212, %c0_213] : memref<1x128xf32, #tpu.memory_space<vmem>>, vector<1x128xf32>
    %236 = vector.broadcast %235 : vector<1x128xf32> to vector<64x128xf32>
    %237 = arith.mulf %234, %236 : vector<64x128xf32>
    %c0_214 = arith.constant 0 : index
    %c0_215 = arith.constant 0 : index
    %238 = vector.load %arg8[%c0_214, %c0_215] : memref<1x128xf32, #tpu.memory_space<vmem>>, vector<1x128xf32>
    %239 = vector.broadcast %238 : vector<1x128xf32> to vector<64x128xf32>
    %240 = arith.addf %237, %239 : vector<64x128xf32>
    %cst_216 = arith.constant 0.000000e+00 : f32
    %241 = vector.broadcast %cst_216 : f32 to vector<64x128xf32>
    %242 = arith.cmpf oge, %240, %241 : vector<64x128xf32>
    %cst_217 = arith.constant 2.000000e-01 : f32
    %243 = vector.broadcast %cst_217 : f32 to vector<64x128xf32>
    %244 = arith.mulf %243, %240 : vector<64x128xf32>
    %245 = arith.select %242, %240, %244 : vector<64x128xi1>, vector<64x128xf32>
    %246 = vector.shape_cast %245 : vector<64x128xf32> to vector<4x16x128xf32>
    %c0_218 = arith.constant 0 : index
    %c0_219 = arith.constant 0 : index
    %247 = vector.load %arg9[%c0_218, %c0_219] : memref<4x128xf32, #tpu.memory_space<vmem>>, vector<4x128xf32>
    %248 = vector.shape_cast %247 : vector<4x128xf32> to vector<4x1x128xf32>
    %249 = vector.broadcast %248 : vector<4x1x128xf32> to vector<4x16x128xf32>
    %250 = arith.mulf %246, %249 : vector<4x16x128xf32>
    %cst_220 = arith.constant dense<0.000000e+00> : vector<16x128xf32>
    %251 = vector.multi_reduction <add>, %250, %cst_220 [0] : vector<4x16x128xf32> to vector<16x128xf32>
    %cst_221 = arith.constant dense<0.000000e+00> : vector<16xf32>
    %252 = vector.multi_reduction <add>, %251, %cst_221 [1] : vector<16x128xf32> to vector<16xf32>
    %253 = vector.shape_cast %252 : vector<16xf32> to vector<16x1xf32>
    %c0_222 = arith.constant 0 : index
    %c0_223 = arith.constant 0 : index
    %254 = vector.load %arg10[%c0_222, %c0_223] : memref<1x1xf32, #tpu.memory_space<vmem>>, vector<1x1xf32>
    %255 = vector.broadcast %254 : vector<1x1xf32> to vector<16x1xf32>
    %256 = arith.addf %253, %255 : vector<16x1xf32>
    %257 = vector.shape_cast %256 : vector<16x1xf32> to vector<1x16x1xf32>
    %c0_224 = arith.constant 0 : index
    %c0_225 = arith.constant 0 : index
    %c0_226 = arith.constant 0 : index
    %258 = vector.load %arg11[%c0_224, %c0_225, %c0_226] : memref<1x16x1xf32, #tpu.memory_space<vmem>>, vector<1x16x1xf32>
    tpu.vector_store %arg11[%c0_224, %c0_225, %c0_226], %257 {strides = array<i32>} : memref<1x16x1xf32, #tpu.memory_space<vmem>>, vector<1x16x1xf32>,
    return
  }
  func.func @transform_0(%arg0: i32) -> (i32, i32, i32, i32, i32) {
    %c0_i32 = arith.constant 0 : i32
    %c0_i32_0 = arith.constant 0 : i32
    %c0_i32_1 = arith.constant 0 : i32
    %c0_i32_2 = arith.constant 0 : i32
    %c0_i32_3 = arith.constant 0 : i32
    return %arg0, %c0_i32, %c0_i32_0, %c0_i32_1, %c0_i32_2 : i32, i32, i32, i32, i32
  }
  func.func @transform_1(%arg0: i32) -> (i32, i32, i32) {
    %c0_i32 = arith.constant 0 : i32
    %c0_i32_0 = arith.constant 0 : i32
    %c0_i32_1 = arith.constant 0 : i32
    %c0_i32_2 = arith.constant 0 : i32
    return %c0_i32, %c0_i32_0, %c0_i32_1 : i32, i32, i32
  }
  func.func @transform_2(%arg0: i32) -> (i32, i32, i32) {
    %c0_i32 = arith.constant 0 : i32
    %c0_i32_0 = arith.constant 0 : i32
    %c0_i32_1 = arith.constant 0 : i32
    %c0_i32_2 = arith.constant 0 : i32
    return %c0_i32, %c0_i32_0, %c0_i32_1 : i32, i32, i32
  }
  func.func @transform_3(%arg0: i32) -> (i32, i32, i32) {
    %c0_i32 = arith.constant 0 : i32
    %c0_i32_0 = arith.constant 0 : i32
    %c0_i32_1 = arith.constant 0 : i32
    %c0_i32_2 = arith.constant 0 : i32
    return %c0_i32, %c0_i32_0, %c0_i32_1 : i32, i32, i32
  }
  func.func @transform_4(%arg0: i32) -> (i32, i32) {
    %c0_i32 = arith.constant 0 : i32
    %c0_i32_0 = arith.constant 0 : i32
    %c0_i32_1 = arith.constant 0 : i32
    return %c0_i32, %c0_i32_0 : i32, i32
  }
  func.func @transform_5(%arg0: i32) -> (i32, i32) {
    %c0_i32 = arith.constant 0 : i32
    %c0_i32_0 = arith.constant 0 : i32
    %c0_i32_1 = arith.constant 0 : i32
    return %c0_i32, %c0_i32_0 : i32, i32
  }
  func.func @transform_6(%arg0: i32) -> (i32, i32) {
    %c0_i32 = arith.constant 0 : i32
    %c0_i32_0 = arith.constant 0 : i32
    %c0_i32_1 = arith.constant 0 : i32
    return %c0_i32, %c0_i32_0 : i32, i32
  }
  func.func @transform_7(%arg0: i32) -> (i32, i32) {
    %c0_i32 = arith.constant 0 : i32
    %c0_i32_0 = arith.constant 0 : i32
    %c0_i32_1 = arith.constant 0 : i32
    return %c0_i32, %c0_i32_0 : i32, i32
  }
  func.func @transform_8(%arg0: i32) -> (i32, i32) {
    %c0_i32 = arith.constant 0 : i32
    %c0_i32_0 = arith.constant 0 : i32
    %c0_i32_1 = arith.constant 0 : i32
    return %c0_i32, %c0_i32_0 : i32, i32
  }
  func.func @transform_9(%arg0: i32) -> (i32, i32) {
    %c0_i32 = arith.constant 0 : i32
    %c0_i32_0 = arith.constant 0 : i32
    %c0_i32_1 = arith.constant 0 : i32
    return %c0_i32, %c0_i32_0 : i32, i32
  }
  func.func @transform_10(%arg0: i32) -> (i32, i32, i32) {
    %c0_i32 = arith.constant 0 : i32
    %c0_i32_0 = arith.constant 0 : i32
    %c0_i32_1 = arith.constant 0 : i32
    return %arg0, %c0_i32, %c0_i32_0 : i32, i32, i32
  }
}

</mosaic_0001>

<bundles_post_ra>
// kernel: discriminator_forward.1
= control target key start
LH: loop header
LB: loop body
LE: loop exit
PB: predicated region body
PF: predicated region fallthrough
CT: control target
= control target key end

     0   :  { %s5008_s15 = smov 0   ;;  %s5528_s0 = inlined_call_operand.vmem [shape: bf16[2,2,17,16,128], index: 0, kind: input, shape index: {}]   ;;  %s5529_s1 = inlined_call_operand.vmem [shape: bf16[4,128,128], index: 1, kind: input, shape index: {}]   ;;  %s5530_s2 = inlined_call_operand.vmem [shape: bf16[4,128,128], index: 2, kind: input, shape index: {}]   ;;  %s5531_s3 = inlined_call_operand.vmem [shape: bf16[4,128,128], index: 3, kind: input, shape index: {}]   ;;  %s5532_s4 = inlined_call_operand.vmem [shape: f32[1,128], index: 4, kind: input, shape index: {}]   ;;  %s5533_s5 = inlined_call_operand.vmem [shape: f32[1,128], index: 5, kind: input, shape index: {}]   ;;  %s5534_s6 = inlined_call_operand.vmem [shape: f32[1,128], index: 6, kind: input, shape index: {}]   ;;  %s5535_s7 = inlined_call_operand.vmem [shape: f32[1,128], index: 7, kind: input, shape index: {}]   ;;  %s5536_s8 = inlined_call_operand.vmem [shape: f32[4,128], index: 8, kind: input, shape index: {}]   ;;  %s5537_s9 = inlined_call_operand.<no memory space> [shape: f32[1,1], index: 9, kind: input, shape index: {}]   ;;  %s5538_s10 = inlined_call_operand.vmem [shape: f32[2,16,1], index: 10, kind: output, shape index: {}]  }
   0x1   :  { %v15_v0 = vstv %s5537_s9 }
   0x2   :  { %16 = vst [vmem:[#allocation4] sm:$0x1] %v15_v0 }
   0x3 LB: > { %s3560_s16 = sadd.s32 4294967295, %s4946_s15   ;;  %p3564_p0 = scmp.ge.s32.totalorder %s4946_s15, 1  ;;  %s4946_s15 = sphi %s5008_s15, %s22_s15  }
   0x4   : > { %p314_p1 = scmp.lt.s32.totalorder %s4946_s15, 3 }
   0x6   : > { %p315_p2 = pnand %p3564_p0, %p314_p1 }
   0x7   : > { %v4780_v1 = vld [vmem:[%s5529_s1 + $0x40] sm:$0xff] (!%p315_p2)   ;;  %p352_p3 = scmp.lt.s32.totalorder (!%p315_p2), %s3560_s16, 1  ;;  %v4781_v2 = vld [vmem:[%s5529_s1 + $0x48] sm:$0xff] (!%p315_p2)   ;;  %v4782_v3 = vld [vmem:[%s5529_s1 + $0x50] sm:$0xff] (!%p315_p2)  }
   0x8   : > { %318 = sbr.rel (%p315_p2) target bundleno = 1291 (0x50b), region = 60  ;;  %4185 = vmatprep.subr.bf16.mxu0 (!%p315_p2), %v4780_v1  ;;  %v4783_v4 = vld [vmem:[%s5529_s1 + $0x58] sm:$0xff] (!%p315_p2)   ;;  %v4784_v6 = vld [vmem:[%s5529_s1 + $0x60] sm:$0xff] (!%p315_p2)   ;;  %v4785_v7 = vld [vmem:[%s5529_s1 + $0x68] sm:$0xff] (!%p315_p2)  }
   0x9   : > { %4186 = vmatpush3.bf16.msra.mxu0 (!%p315_p2), %v4780_v1  ;;  %v4786_v8 = vld [vmem:[%s5529_s1 + $0x70] sm:$0xff] (!%p315_p2)   ;;  %v4787_v9 = vld [vmem:[%s5529_s1 + $0x78] sm:$0xff] (!%p315_p2)   ;;  %v4790_v10 = vld [vmem:[%s5529_s1] sm:$0xff] (!%p315_p2)  }
   0xa   : > { %4187 = vmatprep.subr.bf16.mxu0 (!%p315_p2), %v4781_v2  ;;  %v4793_v13 = vld [vmem:[%s5529_s1 + $0x8] sm:$0xff] (!%p315_p2)   ;;  %v4796_v14 = vld [vmem:[%s5529_s1 + $0x10] sm:$0xff] (!%p315_p2)   ;;  %v4799_v17 = vld [vmem:[%s5529_s1 + $0x18] sm:$0xff] (!%p315_p2)  }
   0xb   : > { %v4802_v18 = vld [vmem:[%s5529_s1 + $0x20] sm:$0xff] (!%p315_p2)   ;;  %v4805_v21 = vld [vmem:[%s5529_s1 + $0x28] sm:$0xff] (!%p315_p2)   ;;  %v4808_v22 = vld [vmem:[%s5529_s1 + $0x30] sm:$0xff] (!%p315_p2)  }
   0xc   : > { %v4811_v25 = vld [vmem:[%s5529_s1 + $0x38] sm:$0xff] (!%p315_p2)   ;;  %v4814_v26 = vld [vmem:[%s5529_s1 + $0x80] sm:$0xff] (!%p315_p2)   ;;  %v4817_v37 = vld [vmem:[%s5529_s1 + $0x88] sm:$0xff] (!%p315_p2)  }
   0xd   : > { %4188 = vmatpush3.bf16.msra.mxu0 (!%p315_p2), %v4781_v2  ;;  %v4820_v38 = vld [vmem:[%s5529_s1 + $0x90] sm:$0xff] (!%p315_p2)   ;;  %v4823_v41 = vld [vmem:[%s5529_s1 + $0x98] sm:$0xff] (!%p315_p2)   ;;  %v4826_v42 = vld [vmem:[%s5529_s1 + $0xa0] sm:$0xff] (!%p315_p2)  }
   0xe   : > { %4189 = vmatprep.subr.bf16.mxu0 (!%p315_p2), %v4782_v3  ;;  %v4829_v45 = vld [vmem:[%s5529_s1 + $0xa8] sm:$0xff] (!%p315_p2)   ;;  %v4832_v46 = vld [vmem:[%s5529_s1 + $0xb0] sm:$0xff] (!%p315_p2)   ;;  %v4835_v49 = vld [vmem:[%s5529_s1 + $0xb8] sm:$0xff] (!%p315_p2)  }
   0xf   : > { %s5540_s16 = smov (!%p352_p3, %s3560_s16), 1  ;;  %v4838_v50 = vld [vmem:[%s5529_s1 + $0xc0] sm:$0xff]   ;;  %v4877_v60 = vld [vmem:[%s5530_s2 + $0x48] sm:$0xff]   ;;  %v4878_v62 = vld [vmem:[%s5530_s2 + $0x50] sm:$0xff]  }
  0x10   : > { %s4769_s22 = smul.u32 272, %s5540_s16  ;;  %v4876_v59 = vld [vmem:[%s5530_s2 + $0x40] sm:$0xff]   ;;  %v4841_v0 = vld [vmem:[%s5529_s1 + $0xc8] sm:$0xff]   ;;  %v4879_v1 = vld [vmem:[%s5530_s2 + $0x58] sm:$0xff]   ;;  %s3976_s17 = sshll.u32 %s5540_s16, 4 }
  0x11   : > { %4190 = vmatpush3.bf16.msra.mxu0 %v4782_v3  ;;  %4377 = vmatprep.subr.bf16.mxu1 %v4876_v59  ;;  %v4844_v2 = vld [vmem:[%s5529_s1 + $0xd0] sm:$0xff]   ;;  %s361_s19 = scalar_lea.vmem %s5538_s10, %s3976_s17 }
  0x12   : > { %s5031_s25 = scalar_lea.vmem %s5528_s0, %s4769_s22  ;;  %4191 = vmatprep.subr.bf16.mxu0 %v4783_v4  ;;  %4378 = vmatpush3.bf16.msra.mxu1 %v4876_v59 }
  0x13   : > { %v4788_v5 = vld [vmem:[%s5031_s25 + $0x88] sm:$0xff]   ;;  %v4789_v11 = vld [vmem:[%s5031_s25 + $0x90] sm:$0xff]   ;;  %v4791_v12 = vld [vmem:[%s5031_s25 + $0x98] sm:$0xff]   ;;  %4379 = vmatprep.subr.bf16.mxu1 %v4877_v60 }
  0x14   : > { %4201 = vmatprep.mubr.bf16.mxu0 %v4788_v5  ;;  %v4792_v15 = vld [vmem:[%s5031_s25 + $0xa0] sm:$0xff]   ;;  %v4794_v16 = vld [vmem:[%s5031_s25 + $0xa8] sm:$0xff]   ;;  %v4795_v19 = vld [vmem:[%s5031_s25 + $0xb0] sm:$0xff]  }
  0x15   : > { %4192 = vmatpush3.bf16.msra.mxu0 %v4783_v4  ;;  %v4797_v20 = vld [vmem:[%s5031_s25 + $0xb8] sm:$0xff]   ;;  %v4798_v23 = vld [vmem:[%s5031_s25 + $0xc0] sm:$0xff]   ;;  %v4800_v24 = vld [vmem:[%s5031_s25 + $0xc8] sm:$0xff]  }
  0x16   : > { %4193 = vmatprep.subr.bf16.mxu0 %v4784_v6  ;;  %v4801_v27 = vld [vmem:[%s5031_s25 + $0xd0] sm:$0xff]   ;;  %v4803_v28 = vld [vmem:[%s5031_s25 + $0xd8] sm:$0xff]   ;;  %v4804_v29 = vld [vmem:[%s5031_s25 + $0xe0] sm:$0xff]   ;;  %4380 = vmatpush3.bf16.msra.mxu1 %v4877_v60 }
  0x17   : > { %v4806_v30 = vld [vmem:[%s5031_s25 + $0xe8] sm:$0xff]   ;;  %v4807_v31 = vld [vmem:[%s5031_s25 + $0xf0] sm:$0xff]   ;;  %v4809_v32 = vld [vmem:[%s5031_s25 + $0xf8] sm:$0xff]   ;;  %4381 = vmatprep.subr.bf16.mxu1 %v4878_v62 }
  0x18   : > { %v4810_v33 = vld [vmem:[%s5031_s25 + $0x100] sm:$0xff]   ;;  %v4813_v35 = vld [vmem:[%s5031_s25 + $0x8] sm:$0xff]   ;;  %v4815_v36 = vld [vmem:[%s5031_s25 + $0x10] sm:$0xff]  }
  0x19   : > { %4194 = vmatpush3.bf16.msra.mxu0 %v4784_v6  ;;  %v4812_v34 = vld [vmem:[%s5031_s25] sm:$0xff]   ;;  %v4816_v39 = vld [vmem:[%s5031_s25 + $0x18] sm:$0xff]   ;;  %v4819_v43 = vld [vmem:[%s5031_s25 + $0x28] sm:$0xff]  }
  0x1a   : > { %4195 = vmatprep.subr.bf16.mxu0 %v4785_v7  ;;  %v4818_v40 = vld [vmem:[%s5031_s25 + $0x20] sm:$0xff]   ;;  %v4821_v44 = vld [vmem:[%s5031_s25 + $0x30] sm:$0xff]   ;;  %v4822_v47 = vld [vmem:[%s5031_s25 + $0x38] sm:$0xff]   ;;  %4382 = vmatpush3.bf16.msra.mxu1 %v4878_v62 }
  0x1b   : > { %v4824_v48 = vld [vmem:[%s5031_s25 + $0x40] sm:$0xff]   ;;  %v4825_v51 = vld [vmem:[%s5031_s25 + $0x48] sm:$0xff]   ;;  %v4827_v52 = vld [vmem:[%s5031_s25 + $0x50] sm:$0xff]   ;;  %4383 = vmatprep.subr.bf16.mxu1 %v4879_v1 }
  0x1c   : > { %v4828_v53 = vld [vmem:[%s5031_s25 + $0x58] sm:$0xff]   ;;  %v4830_v54 = vld [vmem:[%s5031_s25 + $0x60] sm:$0xff]   ;;  %v4831_v55 = vld [vmem:[%s5031_s25 + $0x68] sm:$0xff]  }
  0x1d   : > { %4196 = vmatpush3.bf16.msra.mxu0 %v4785_v7  ;;  %v4833_v56 = vld [vmem:[%s5031_s25 + $0x70] sm:$0xff]   ;;  %v4834_v57 = vld [vmem:[%s5031_s25 + $0x78] sm:$0xff]   ;;  %v4836_v58 = vld [vmem:[%s5031_s25 + $0x8] sm:$0xff]  }
  0x1e   : > { %4197 = vmatprep.subr.bf16.mxu0 %v4786_v8  ;;  %v4837_v61 = vld [vmem:[%s5031_s25 + $0x10] sm:$0xff]   ;;  %v4839_v63 = vld [vmem:[%s5031_s25 + $0x18] sm:$0xff]   ;;  %v4840_v3 = vld [vmem:[%s5031_s25 + $0x20] sm:$0xff]   ;;  %4384 = vmatpush3.bf16.msra.mxu1 %v4879_v1 }
  0x1f   : > { %v4842_v4 = vld [vmem:[%s5031_s25 + $0x28] sm:$0xff]   ;;  %v4847_v5 = vld [vmem:[%s5529_s1 + $0xd8] sm:$0xff]   ;;  %v4850_v6 = vld [vmem:[%s5529_s1 + $0xe0] sm:$0xff]  }
  0x20   : > { %v4843_v7 = vld [vmem:[%s5031_s25 + $0x30] sm:$0xff]  }
  0x21   : > { %4198 = vmatpush3.bf16.msra.mxu0 %v4786_v8  ;;  %v4845_v8 = vld [vmem:[%s5031_s25 + $0x38] sm:$0xff]  }
  0x22   : > { %4199 = vmatprep.subr.bf16.mxu0 %v4787_v9 }
  0x25   : > { %4200 = vmatpush3.bf16.msra.mxu0 %v4787_v9  ;;  %v4853_v9 = vld [vmem:[%s5529_s1 + $0xe8] sm:$0xff]  }
  0x26   : > { %4233 = vmatprep.subr.bf16.mxu0 %v4790_v10 }
  0x28   : > { %4202 = vmatmul.mubr.bf16.vlgmr.msra.gmra.mrb[0].mxu0 %v4789_v11  ;;  %v4846_v11 = vld [vmem:[%s5031_s25 + $0x40] sm:$0xff]  }
  0x29   : > { %4234 = vmatpush3.bf16.msra.mxu0 %v4790_v10  ;;  %4205 = vmatprep.mubr.bf16.mxu0 %v4791_v12  ;;  %v4856_v10 = vld [vmem:[%s5529_s1 + $0xf0] sm:$0xff]   ;;  %v4848_v12 = vld [vmem:[%s5031_s25 + $0x48] sm:$0xff]  }
  0x2a   : > { %4235 = vmatprep.subr.bf16.mxu0 %v4793_v13 }
  0x2d   : > { %4236 = vmatpush3.bf16.msra.mxu0 %v4793_v13  ;;  %v4859_v13 = vld [vmem:[%s5529_s1 + $0xf8] sm:$0xff]  }
  0x2e   : > { %4237 = vmatprep.subr.bf16.mxu0 %v4796_v14 }
  0x30   : > { %4206 = vmatmul.mubr.bf16.gmra.mrb[4].mxu0 %v4792_v15  ;;  %v4851_v15 = vld [vmem:[%s5031_s25 + $0x58] sm:$0xff]  }
  0x31   : > { %4209 = vmatprep.mubr.bf16.mxu0 %v4794_v16  ;;  %4238 = vmatpush3.bf16.msra.mxu0 %v4796_v14  ;;  %v4849_v14 = vld [vmem:[%s5031_s25 + $0x50] sm:$0xff]   ;;  %v4852_v16 = vld [vmem:[%s5031_s25 + $0x60] sm:$0xff]  }
  0x32   : > { %4239 = vmatprep.subr.bf16.mxu0 %v4799_v17 }
  0x35   : > { %4240 = vmatpush3.bf16.msra.mxu0 %v4799_v17  ;;  %v4854_v17 = vld [vmem:[%s5031_s25 + $0x68] sm:$0xff]  }
  0x36   : > { %4241 = vmatprep.subr.bf16.mxu0 %v4802_v18 }
  0x38   : > { %4210 = vmatmul.mubr.bf16.gmra.mrb[8].mxu0 %v4795_v19  ;;  %v4857_v19 = vld [vmem:[%s5031_s25 + $0x78] sm:$0xff]  }
  0x39   : > { %4213 = vmatprep.mubr.bf16.mxu0 %v4797_v20  ;;  %4242 = vmatpush3.bf16.msra.mxu0 %v4802_v18  ;;  %v4855_v18 = vld [vmem:[%s5031_s25 + $0x70] sm:$0xff]   ;;  %v4858_v20 = vld [vmem:[%s5031_s25 + $0x80] sm:$0xff]  }
  0x3a   : > { %4243 = vmatprep.subr.bf16.mxu0 %v4805_v21 }
  0x3d   : > { %4244 = vmatpush3.bf16.msra.mxu0 %v4805_v21  ;;  %v4860_v21 = vld [vmem:[%s5031_s25 + $0x90] sm:$0xff]  }
  0x3e   : > { %4245 = vmatprep.subr.bf16.mxu0 %v4808_v22 }
  0x40   : > { %4214 = vmatmul.mubr.bf16.gmra.mrb[12].mxu0 %v4798_v23  ;;  %v4862_v23 = vld [vmem:[%s5031_s25 + $0xa0] sm:$0xff]  }
  0x41   : > { %4217 = vmatprep.mubr.bf16.mxu0 %v4800_v24  ;;  %4246 = vmatpush3.bf16.msra.mxu0 %v4808_v22  ;;  %v4861_v22 = vld [vmem:[%s5031_s25 + $0x98] sm:$0xff]   ;;  %v4863_v24 = vld [vmem:[%s5031_s25 + $0xa8] sm:$0xff]  }
  0x42   : > { %4247 = vmatprep.subr.bf16.mxu0 %v4811_v25 }
  0x45   : > { %4248 = vmatpush3.bf16.msra.mxu0 %v4811_v25  ;;  %v4864_v25 = vld [vmem:[%s5031_s25 + $0xb0] sm:$0xff]  }
  0x46   : > { %4281 = vmatprep.subr.bf16.mxu0 %v4814_v26 }
  0x48   : > { %4218 = vmatmul.mubr.bf16.gmra.mrb[16].mxu0 %v4801_v27  ;;  %v4866_v27 = vld [vmem:[%s5031_s25 + $0xc0] sm:$0xff]  }
  0x49   : > { %4221 = vmatprep.mubr.bf16.mxu0 %v4803_v28  ;;  %v4867_v28 = vld [vmem:[%s5031_s25 + $0xc8] sm:$0xff]  }
  0x50   : > { %4222 = vmatmul.mubr.bf16.gmra.mrb[20].mxu0 %v4804_v29  ;;  %v4868_v29 = vld [vmem:[%s5031_s25 + $0xd0] sm:$0xff]  }
  0x51   : > { %4225 = vmatprep.mubr.bf16.mxu0 %v4806_v30  ;;  %v4869_v30 = vld [vmem:[%s5031_s25 + $0xd8] sm:$0xff]  }
  0x58   : > { %4226 = vmatmul.mubr.bf16.gmra.mrb[24].mxu0 %v4807_v31  ;;  %v4870_v31 = vld [vmem:[%s5031_s25 + $0xe0] sm:$0xff]  }
  0x59   : > { %4229 = vmatprep.mubr.bf16.mxu0 %v4809_v32  ;;  %v4871_v32 = vld [vmem:[%s5031_s25 + $0xe8] sm:$0xff]  }
  0x60   : > { %4230 = vmatmul.mubr.bf16.gmra.mrb[28].mxu0 %v4810_v33  ;;  %v4872_v33 = vld [vmem:[%s5031_s25 + $0xf0] sm:$0xff]  }
  0x61   : > { %4249 = vmatprep.mubr.bf16.mxu0 %v4812_v34  ;;  %v4873_v34 = vld [vmem:[%s5031_s25 + $0xf8] sm:$0xff]  }
  0x68   : > { %4250 = vmatmul.mubr.bf16.vlgmr.msra.gmra.mrb[0].mxu0 %v4813_v35  ;;  %v4874_v35 = vld [vmem:[%s5031_s25 + $0x100] sm:$0xff]  }
  0x69   : > { %4282 = vmatpush3.bf16.msra.mxu0 %v4814_v26  ;;  %4253 = vmatprep.mubr.bf16.mxu0 %v4815_v36  ;;  %v4865_v26 = vld [vmem:[%s5031_s25 + $0xb8] sm:$0xff]   ;;  %v4875_v36 = vld [vmem:[%s5031_s25 + $0x108] sm:$0xff]  }
  0x6a   : > { %4283 = vmatprep.subr.bf16.mxu0 %v4817_v37 }
  0x6d   : > { %4284 = vmatpush3.bf16.msra.mxu0 %v4817_v37  ;;  %v4880_v37 = vld [vmem:[%s5530_s2 + $0x60] sm:$0xff]  }
  0x6e   : > { %4285 = vmatprep.subr.bf16.mxu0 %v4820_v38  ;;  %4385 = vmatprep.subr.bf16.mxu1 %v4880_v37 }
  0x6f   : > { %4386 = vmatpush3.bf16.msra.mxu1 %v4880_v37 }
  0x70   : > { %4254 = vmatmul.mubr.bf16.gmra.mrb[4].mxu0 %v4816_v39  ;;  %v4882_v39 = vld [vmem:[%s5530_s2 + $0x70] sm:$0xff]  }
  0x71   : > { %4257 = vmatprep.mubr.bf16.mxu0 %v4818_v40  ;;  %4286 = vmatpush3.bf16.msra.mxu0 %v4820_v38  ;;  %v4881_v38 = vld [vmem:[%s5530_s2 + $0x68] sm:$0xff]   ;;  %v4883_v40 = vld [vmem:[%s5530_s2 + $0x78] sm:$0xff]  }
  0x72   : > { %4287 = vmatprep.subr.bf16.mxu0 %v4823_v41  ;;  %4387 = vmatprep.subr.bf16.mxu1 %v4881_v38 }
  0x73   : > { %4388 = vmatpush3.bf16.msra.mxu1 %v4881_v38  ;;  %v4889_v38 = vld [vmem:[%s5530_s2 + $0x28] sm:$0xff]  }
  0x74   : > { %4389 = vmatprep.subr.bf16.mxu1 %v4882_v39 }
  0x75   : > { %4288 = vmatpush3.bf16.msra.mxu0 %v4823_v41  ;;  %v4884_v41 = vld [vmem:[%s5530_s2] sm:$0xff]  }
  0x76   : > { %4289 = vmatprep.subr.bf16.mxu0 %v4826_v42 }
  0x77   : > { %4390 = vmatpush3.bf16.msra.mxu1 %v4882_v39 }
  0x78   : > { %4258 = vmatmul.mubr.bf16.gmra.mrb[8].mxu0 %v4819_v43  ;;  %4391 = vmatprep.subr.bf16.mxu1 %v4883_v40 }
  0x79   : > { %4261 = vmatprep.mubr.bf16.mxu0 %v4821_v44  ;;  %4290 = vmatpush3.bf16.msra.mxu0 %v4826_v42 }
  0x7a   : > { %4291 = vmatprep.subr.bf16.mxu0 %v4829_v45 }
  0x7b   : > { %4392 = vmatpush3.bf16.msra.mxu1 %v4883_v40 }
  0x7c   : > { %4409 = vmatprep.subr.bf16.mxu1 %v4884_v41 }
  0x7d   : > { %4292 = vmatpush3.bf16.msra.mxu0 %v4829_v45 }
  0x7e   : > { %4293 = vmatprep.subr.bf16.mxu0 %v4832_v46 }
  0x80   : > { %4262 = vmatmul.mubr.bf16.gmra.mrb[12].mxu0 %v4822_v47 }
  0x81   : > { %4265 = vmatprep.mubr.bf16.mxu0 %v4824_v48  ;;  %4294 = vmatpush3.bf16.msra.mxu0 %v4832_v46 }
  0x82   : > { %4295 = vmatprep.subr.bf16.mxu0 %v4835_v49 }
  0x85   : > { %4296 = vmatpush3.bf16.msra.mxu0 %v4835_v49 }
  0x86   : > { %4329 = vmatprep.subr.bf16.mxu0 %v4838_v50 }
  0x88   : > { %4266 = vmatmul.mubr.bf16.gmra.mrb[16].mxu0 %v4825_v51 }
  0x89   : > { %4269 = vmatprep.mubr.bf16.mxu0 %v4827_v52 }
  0x90   : > { %4270 = vmatmul.mubr.bf16.gmra.mrb[20].mxu0 %v4828_v53 }
  0x91   : > { %4273 = vmatprep.mubr.bf16.mxu0 %v4830_v54 }
  0x98   : > { %4274 = vmatmul.mubr.bf16.gmra.mrb[24].mxu0 %v4831_v55 }
  0x99   : > { %4277 = vmatprep.mubr.bf16.mxu0 %v4833_v56 }
  0xa0   : > { %4278 = vmatmul.mubr.bf16.gmra.mrb[28].mxu0 %v4834_v57 }
  0xa1   : > { %4297 = vmatprep.mubr.bf16.mxu0 %v4836_v58 }
  0xa8   : > { %4298 = vmatmul.mubr.bf16.vlgmr.msra.gmra.mrb[0].mxu0 %v4837_v61 }
  0xa9   : > { %4330 = vmatpush3.bf16.msra.mxu0 %v4838_v50  ;;  %4301 = vmatprep.mubr.bf16.mxu0 %v4839_v63 }
  0xaa   : > { %4331 = vmatprep.subr.bf16.mxu0 %v4841_v0 }
  0xad   : > { %4332 = vmatpush3.bf16.msra.mxu0 %v4841_v0 }
  0xae   : > { %4333 = vmatprep.subr.bf16.mxu0 %v4844_v2 }
  0xb0   : > { %4302 = vmatmul.mubr.bf16.gmra.mrb[4].mxu0 %v4840_v3 }
  0xb1   : > { %4305 = vmatprep.mubr.bf16.mxu0 %v4842_v4  ;;  %4334 = vmatpush3.bf16.msra.mxu0 %v4844_v2 }
  0xb2   : > { %4335 = vmatprep.subr.bf16.mxu0 %v4847_v5 }
  0xb5   : > { %4336 = vmatpush3.bf16.msra.mxu0 %v4847_v5 }
  0xb6   : > { %4337 = vmatprep.subr.bf16.mxu0 %v4850_v6 }
  0xb8   : > { %4306 = vmatmul.mubr.bf16.gmra.mrb[8].mxu0 %v4843_v7 }
  0xb9   : > { %4309 = vmatprep.mubr.bf16.mxu0 %v4845_v8  ;;  %4338 = vmatpush3.bf16.msra.mxu0 %v4850_v6  ;;  %v4885_v6 = vld [vmem:[%s5530_s2 + $0x8] sm:$0xff]  }
  0xba   : > { %4339 = vmatprep.subr.bf16.mxu0 %v4853_v9 }
  0xbd   : > { %4340 = vmatpush3.bf16.msra.mxu0 %v4853_v9 }
  0xbe   : > { %4341 = vmatprep.subr.bf16.mxu0 %v4856_v10 }
  0xc0   : > { %4310 = vmatmul.mubr.bf16.gmra.mrb[12].mxu0 %v4846_v11 }
  0xc1   : > { %4313 = vmatprep.mubr.bf16.mxu0 %v4848_v12  ;;  %4342 = vmatpush3.bf16.msra.mxu0 %v4856_v10 }
  0xc2   : > { %4343 = vmatprep.subr.bf16.mxu0 %v4859_v13 }
  0xc5   : > { %4344 = vmatpush3.bf16.msra.mxu0 %v4859_v13 }
  0xc8   : > { %4314 = vmatmul.mubr.bf16.gmra.mrb[16].mxu0 %v4849_v14  ;;  %v4886_v14 = vld [vmem:[%s5530_s2 + $0x10] sm:$0xff]  }
  0xc9   : > { %4317 = vmatprep.mubr.bf16.mxu0 %v4851_v15 }
  0xd0   : > { %4318 = vmatmul.mubr.bf16.gmra.mrb[20].mxu0 %v4852_v16 }
  0xd1   : > { %4321 = vmatprep.mubr.bf16.mxu0 %v4854_v17 }
  0xd8   : > { %4322 = vmatmul.mubr.bf16.gmra.mrb[24].mxu0 %v4855_v18 }
  0xd9   : > { %4325 = vmatprep.mubr.bf16.mxu0 %v4857_v19 }
  0xe0   : > { %4326 = vmatmul.mubr.bf16.gmra.mrb[28].mxu0 %v4858_v20 }
  0xe1   : > { %4345 = vmatprep.mubr.bf16.mxu0 %v4860_v21 }
  0xe8   : > { %4346 = vmatmul.mubr.bf16.vlgmr.msra.gmra.mrb[0].mxu0 %v4861_v22  ;;  %v4887_v22 = vld [vmem:[%s5530_s2 + $0x18] sm:$0xff]  }
  0xe9   : > { %4349 = vmatprep.mubr.bf16.mxu0 %v4862_v23 }
  0xf0   : > { %4350 = vmatmul.mubr.bf16.gmra.mrb[4].mxu0 %v4863_v24 }
  0xf1   : > { %4353 = vmatprep.mubr.bf16.mxu0 %v4864_v25 }
  0xf8   : > { %4354 = vmatmul.mubr.bf16.gmra.mrb[8].mxu0 %v4865_v26 }
  0xf9   : > { %4357 = vmatprep.mubr.bf16.mxu0 %v4866_v27 }
 0x100   : > { %4358 = vmatmul.mubr.bf16.gmra.mrb[12].mxu0 %v4867_v28 }
 0x101   : > { %4361 = vmatprep.mubr.bf16.mxu0 %v4868_v29 }
 0x108   : > { %4362 = vmatmul.mubr.bf16.gmra.mrb[16].mxu0 %v4869_v30  ;;  %v4888_v30 = vld [vmem:[%s5530_s2 + $0x20] sm:$0xff]  }
 0x109   : > { %4365 = vmatprep.mubr.bf16.mxu0 %v4870_v31 }
 0x110   : > { %4366 = vmatmul.mubr.bf16.gmra.mrb[20].mxu0 %v4871_v32 }
 0x111   : > { %4369 = vmatprep.mubr.bf16.mxu0 %v4872_v33 }
 0x118   : > { %4370 = vmatmul.mubr.bf16.gmra.mrb[24].mxu0 %v4873_v34 }
 0x119   : > { %4373 = vmatprep.mubr.bf16.mxu0 %v4874_v35 }
 0x120   : > { %4374 = vmatmul.mubr.bf16.gmra.mrb[28].mxu0 %v4875_v36 }
 0x1bb   : > { %v4347_v42 = vpop.f32.mrb[0].mxu0 }
 0x1bc   : > { %v1879_v43 = vmul.f32 0.2, %v4347_v42  ;;  %v1686_v44 = vpop.f32.mrb[1].mxu0  ;;  %vm1847_vm0 = vcmp.ge.f32.partialorder %v4347_v42, 0.0 }
 0x1bd   : > { %v1877_v45 = vmul.f32 0.2, %v1686_v44  ;;  %v4348_v46 = vpop.f32.mrb[2].mxu0  ;;  %vm1845_vm2 = vcmp.ge.f32.partialorder %v1686_v44, 0.0 }
 0x1be   : > { %vm1848_vm1 = vcmp.ge.f32.partialorder %v4348_v46, 0.0  ;;  %v1880_v47 = vmul.f32 0.2, %v4348_v46  ;;  %v1689_v48 = vpop.f32.mrb[3].mxu0  ;;  %v1911_v50 = vsel %vm1847_vm0, %v4347_v42, %v1879_v43 }
 0x1bf   : > { %v1878_v49 = vmul.f32 0.2, %v1689_v48  ;;  %vm1846_vm3 = vcmp.ge.f32.partialorder %v1689_v48, 0.0  ;;  %v1909_v53 = vsel %vm1845_vm2, %v1686_v44, %v1877_v45 }
 0x1c0   : > { %v1912_v51 = vsel %vm1848_vm1, %v4348_v46, %v1880_v47  ;;  %v4890_v46 = vld [vmem:[%s5530_s2 + $0x30] sm:$0xff]  }
 0x1c1   : > { %v5211_v52 = vpack.c.bf16 %v1912_v51, %v1911_v50  ;;  %v1910_v54 = vsel %vm1846_vm3, %v1689_v48, %v1878_v49 }
 0x1c2   : > { %v1941_v55 = vpack.c.bf16 %v1910_v54, %v1909_v53 }
 0x1c3   : > { %v4351_v56 = vpop.f32.mrb[4].mxu0 }
 0x1c4   : > { %v1883_v57 = vmul.f32 0.2, %v4351_v56  ;;  %v1702_v58 = vpop.f32.mrb[5].mxu0  ;;  %4393 = vmatprep.mubr.bf16.mxu1 %v1941_v55  ;;  %vm1851_vm4 = vcmp.ge.f32.partialorder %v4351_v56, 0.0  ;;  %v4891_v55 = vld [vmem:[%s5530_s2 + $0x38] sm:$0xff]  }
 0x1c5   : > { %v1881_v59 = vmul.f32 0.2, %v1702_v58  ;;  %v4352_v60 = vpop.f32.mrb[6].mxu0  ;;  %vm1849_vm5 = vcmp.ge.f32.partialorder %v1702_v58, 0.0 }
 0x1c6   : > { %vm1852_vm6 = vcmp.ge.f32.partialorder %v4352_v60, 0.0  ;;  %v1884_v61 = vmul.f32 0.2, %v4352_v60  ;;  %v1705_v62 = vpop.f32.mrb[7].mxu0  ;;  %v1915_v0 = vsel %vm1851_vm4, %v4351_v56, %v1883_v57 }
 0x1c7   : > { %vm1850_vm7 = vcmp.ge.f32.partialorder %v1705_v62, 0.0  ;;  %v1882_v63 = vmul.f32 0.2, %v1705_v62  ;;  %v1913_v2 = vsel %vm1849_vm5, %v1702_v58, %v1881_v59 }
 0x1c8   : > { %v1916_v1 = vsel %vm1852_vm6, %v4352_v60, %v1884_v61 }
 0x1c9   : > { %v1914_v3 = vsel %vm1850_vm7, %v1705_v62, %v1882_v63  ;;  %v5213_v4 = vpack.c.bf16 %v1916_v1, %v1915_v0  ;;  %v4892_v63 = vld [vmem:[%s5530_s2 + $0x80] sm:$0xff]  }
 0x1ca   : > { %v5215_v5 = vpack.c.bf16 %v1914_v3, %v1913_v2 }
 0x1cb   : > { %v4355_v7 = vpop.f32.mrb[8].mxu0 }
 0x1cc   : > { %v1887_v8 = vmul.f32 0.2, %v4355_v7  ;;  %v1718_v9 = vpop.f32.mrb[9].mxu0  ;;  %4394 = vmatmul.mubr.bf16.vlgmr.msra.gmra.mrb[0].mxu1 %v5215_v5  ;;  %vm1855_vm8 = vcmp.ge.f32.partialorder %v4355_v7, 0.0 }
 0x1cd   : > { %v1885_v10 = vmul.f32 0.2, %v1718_v9  ;;  %v4356_v11 = vpop.f32.mrb[10].mxu0  ;;  %4410 = vmatpush3.bf16.msra.mxu1 %v4884_v41  ;;  %vm1853_vm9 = vcmp.ge.f32.partialorder %v1718_v9, 0.0 }
 0x1ce   : > { %vm1856_vm10 = vcmp.ge.f32.partialorder %v4356_v11, 0.0  ;;  %v1888_v12 = vmul.f32 0.2, %v4356_v11  ;;  %v1721_v13 = vpop.f32.mrb[11].mxu0  ;;  %4411 = vmatprep.subr.bf16.mxu1 %v4885_v6  ;;  %v1919_v16 = vsel %vm1855_vm8, %v4355_v7, %v1887_v8 }
 0x1cf   : > { %vm1854_vm11 = vcmp.ge.f32.partialorder %v1721_v13, 0.0  ;;  %v1886_v15 = vmul.f32 0.2, %v1721_v13  ;;  %v1917_v18 = vsel %vm1853_vm9, %v1718_v9, %v1885_v10 }
 0x1d0   : > { %v1920_v17 = vsel %vm1856_vm10, %v4356_v11, %v1888_v12 }
 0x1d1   : > { %v1918_v19 = vsel %vm1854_vm11, %v1721_v13, %v1886_v15  ;;  %4412 = vmatpush3.bf16.msra.mxu1 %v4885_v6  ;;  %v5224_v20 = vpack.c.bf16 %v1920_v17, %v1919_v16 }
 0x1d2   : > { %v5226_v21 = vpack.c.bf16 %v1918_v19, %v1917_v18  ;;  %4413 = vmatprep.subr.bf16.mxu1 %v4886_v14 }
 0x1d3   : > { %v4359_v23 = vpop.f32.mrb[12].mxu0 }
 0x1d4   : > { %v1891_v24 = vmul.f32 0.2, %v4359_v23  ;;  %v1734_v25 = vpop.f32.mrb[13].mxu0  ;;  %4397 = vmatprep.mubr.bf16.mxu1 %v5226_v21  ;;  %vm1859_vm12 = vcmp.ge.f32.partialorder %v4359_v23, 0.0 }
 0x1d5   : > { %v1889_v26 = vmul.f32 0.2, %v1734_v25  ;;  %v4360_v27 = vpop.f32.mrb[14].mxu0  ;;  %4414 = vmatpush3.bf16.msra.mxu1 %v4886_v14  ;;  %vm1857_vm13 = vcmp.ge.f32.partialorder %v1734_v25, 0.0 }
 0x1d6   : > { %vm1860_vm14 = vcmp.ge.f32.partialorder %v4360_v27, 0.0  ;;  %v1892_v28 = vmul.f32 0.2, %v4360_v27  ;;  %v1737_v29 = vpop.f32.mrb[15].mxu0  ;;  %4415 = vmatprep.subr.bf16.mxu1 %v4887_v22  ;;  %v1923_v32 = vsel %vm1859_vm12, %v4359_v23, %v1891_v24 }
 0x1d7   : > { %vm1858_vm15 = vcmp.ge.f32.partialorder %v1737_v29, 0.0  ;;  %v1890_v31 = vmul.f32 0.2, %v1737_v29  ;;  %v1921_v34 = vsel %vm1857_vm13, %v1734_v25, %v1889_v26 }
 0x1d8   : > { %v1924_v33 = vsel %vm1860_vm14, %v4360_v27, %v1892_v28 }
 0x1d9   : > { %v1922_v35 = vsel %vm1858_vm15, %v1737_v29, %v1890_v31  ;;  %4416 = vmatpush3.bf16.msra.mxu1 %v4887_v22  ;;  %v5235_v36 = vpack.c.bf16 %v1924_v33, %v1923_v32 }
 0x1da   : > { %v5237_v37 = vpack.c.bf16 %v1922_v35, %v1921_v34  ;;  %4417 = vmatprep.subr.bf16.mxu1 %v4888_v30 }
 0x1db   : > { %v4363_v39 = vpop.f32.mrb[16].mxu0 }
 0x1dc   : > { %v1895_v40 = vmul.f32 0.2, %v4363_v39  ;;  %v1750_v41 = vpop.f32.mrb[17].mxu0  ;;  %4398 = vmatmul.mubr.bf16.gmra.mrb[4].mxu1 %v5237_v37  ;;  %vm1863_vm0 = vcmp.ge.f32.partialorder %v4363_v39, 0.0 }
 0x1dd   : > { %v1893_v42 = vmul.f32 0.2, %v1750_v41  ;;  %v4364_v43 = vpop.f32.mrb[18].mxu0  ;;  %4418 = vmatpush3.bf16.msra.mxu1 %v4888_v30  ;;  %vm1861_vm1 = vcmp.ge.f32.partialorder %v1750_v41, 0.0 }
 0x1de   : > { %vm1864_vm2 = vcmp.ge.f32.partialorder %v4364_v43, 0.0  ;;  %v1896_v44 = vmul.f32 0.2, %v4364_v43  ;;  %v1753_v45 = vpop.f32.mrb[19].mxu0  ;;  %4419 = vmatprep.subr.bf16.mxu1 %v4889_v38  ;;  %v1927_v48 = vsel %vm1863_vm0, %v4363_v39, %v1895_v40 }
 0x1df   : > { %vm1862_vm3 = vcmp.ge.f32.partialorder %v1753_v45, 0.0  ;;  %v1894_v47 = vmul.f32 0.2, %v1753_v45  ;;  %v1925_v50 = vsel %vm1861_vm1, %v1750_v41, %v1893_v42  ;;  %v4948_v41 = vmov 0   ;;  %v4893_v42 = vld [vmem:[%s5530_s2 + $0x88] sm:$0xff]  }
 0x1e0   : > { %v1928_v49 = vsel %vm1864_vm2, %v4364_v43, %v1896_v44  ;;  %v4894_v43 = vld [vmem:[%s5530_s2 + $0x90] sm:$0xff]   ;;  %v4895_v44 = vld [vmem:[%s5530_s2 + $0x98] sm:$0xff]  }
 0x1e1   : > { %v1926_v51 = vsel %vm1862_vm3, %v1753_v45, %v1894_v47  ;;  %4420 = vmatpush3.bf16.msra.mxu1 %v4889_v38  ;;  %v5246_v53 = vpack.c.bf16 %v1928_v49, %v1927_v48  ;;  %v4896_v45 = vld [vmem:[%s5530_s2 + $0xa0] sm:$0xff]   ;;  %v4898_v47 = vld [vmem:[%s5530_s2 + $0xb0] sm:$0xff]   ;;  %v4899_v48 = vld [vmem:[%s5530_s2 + $0xb8] sm:$0xff]  }
 0x1e2   : > { %v5248_v54 = vpack.c.bf16 %v1926_v51, %v1925_v50  ;;  %4421 = vmatprep.subr.bf16.mxu1 %v4890_v46  ;;  %v4900_v49 = vld [vmem:[%s5530_s2 + $0xc0] sm:$0xff]   ;;  %v4901_v50 = vld [vmem:[%s5530_s2 + $0xc8] sm:$0xff]   ;;  %v4903_v51 = vld [vmem:[%s5530_s2 + $0xd8] sm:$0xff]  }
 0x1e3   : > { %v4367_v56 = vpop.f32.mrb[20].mxu0 }
 0x1e4   : > { %v1899_v57 = vmul.f32 0.2, %v4367_v56  ;;  %v1766_v58 = vpop.f32.mrb[21].mxu0  ;;  %4401 = vmatprep.mubr.bf16.mxu1 %v5248_v54  ;;  %vm1867_vm4 = vcmp.ge.f32.partialorder %v4367_v56, 0.0 }
 0x1e5   : > { %v1897_v59 = vmul.f32 0.2, %v1766_v58  ;;  %v4368_v60 = vpop.f32.mrb[22].mxu0  ;;  %4422 = vmatpush3.bf16.msra.mxu1 %v4890_v46  ;;  %vm1865_vm5 = vcmp.ge.f32.partialorder %v1766_v58, 0.0  ;;  %v4897_v46 = vld [vmem:[%s5530_s2 + $0xa8] sm:$0xff]  }
 0x1e6   : > { %vm1868_vm6 = vcmp.ge.f32.partialorder %v4368_v60, 0.0  ;;  %v1900_v61 = vmul.f32 0.2, %v4368_v60  ;;  %v1769_v62 = vpop.f32.mrb[23].mxu0  ;;  %4423 = vmatprep.subr.bf16.mxu1 %v4891_v55  ;;  %v1931_v1 = vsel %vm1867_vm4, %v4367_v56, %v1899_v57  ;;  %v4909_v56 = vld [vmem:[%s5531_s3 + $0x48] sm:$0xff]   ;;  %v4914_v57 = vld [vmem:[%s5531_s3 + $0x70] sm:$0xff]  }
 0x1e7   : > { %vm1866_vm7 = vcmp.ge.f32.partialorder %v1769_v62, 0.0  ;;  %v1898_v0 = vmul.f32 0.2, %v1769_v62  ;;  %v1929_v3 = vsel %vm1865_vm5, %v1766_v58, %v1897_v59  ;;  %v4915_v58 = vld [vmem:[%s5531_s3 + $0x78] sm:$0xff]   ;;  %v5371_v59 = vld [vmem:[%s5531_s3] sm:$0xff]  }
 0x1e8   : > { %v1932_v2 = vsel %vm1868_vm6, %v4368_v60, %v1900_v61  ;;  %v5377_v60 = vld [vmem:[%s5532_s4] ss:$0 sm:$0xff] }
 0x1e9   : > { %v1930_v6 = vsel %vm1866_vm7, %v1769_v62, %v1898_v0  ;;  %4424 = vmatpush3.bf16.msra.mxu1 %v4891_v55  ;;  %v5257_v7 = vpack.c.bf16 %v1932_v2, %v1931_v1  ;;  %v4908_v55 = vld [vmem:[%s5531_s3 + $0x40] sm:$0xff]  }
 0x1ea   : > { %v5259_v8 = vpack.c.bf16 %v1930_v6, %v1929_v3  ;;  %4441 = vmatprep.subr.bf16.mxu1 %v4892_v63  ;;  %v5382_v62 = vld [vmem:[%s5533_s5] ss:$0 sm:$0xff] }
 0x1eb   : > { %v4371_v9 = vpop.f32.mrb[24].mxu0 }
 0x1ec   : > { %v1903_v10 = vmul.f32 0.2, %v4371_v9  ;;  %v1782_v11 = vpop.f32.mrb[25].mxu0  ;;  %4402 = vmatmul.mubr.bf16.gmra.mrb[8].mxu1 %v5259_v8  ;;  %vm1871_vm8 = vcmp.ge.f32.partialorder %v4371_v9, 0.0 }
 0x1ed   : > { %v1901_v12 = vmul.f32 0.2, %v1782_v11  ;;  %v4372_v13 = vpop.f32.mrb[26].mxu0  ;;  %vm1869_vm9 = vcmp.ge.f32.partialorder %v1782_v11, 0.0 }
 0x1ee   : > { %vm1872_vm10 = vcmp.ge.f32.partialorder %v4372_v13, 0.0  ;;  %v1904_v14 = vmul.f32 0.2, %v4372_v13  ;;  %v1785_v15 = vpop.f32.mrb[27].mxu0  ;;  %v1935_v17 = vsel %vm1871_vm8, %v4371_v9, %v1903_v10 }
 0x1ef   : > { %vm1870_vm11 = vcmp.ge.f32.partialorder %v1785_v15, 0.0  ;;  %v1902_v16 = vmul.f32 0.2, %v1785_v15  ;;  %v1933_v19 = vsel %vm1869_vm9, %v1782_v11, %v1901_v12 }
 0x1f0   : > { %v1936_v18 = vsel %vm1872_vm10, %v4372_v13, %v1904_v14 }
 0x1f1   : > { %v1934_v22 = vsel %vm1870_vm11, %v1785_v15, %v1902_v16  ;;  %v5262_v23 = vpack.c.bf16 %v1936_v18, %v1935_v17 }
 0x1f2   : > { %v5264_v24 = vpack.c.bf16 %v1934_v22, %v1933_v19 }
 0x1f3   : > { %v4375_v25 = vpop.f32.mrb[28].mxu0 }
 0x1f4   : > { %v1907_v26 = vmul.f32 0.2, %v4375_v25  ;;  %v1798_v27 = vpop.f32.mrb[29].mxu0  ;;  %4405 = vmatprep.mubr.bf16.mxu1 %v5264_v24  ;;  %vm1875_vm12 = vcmp.ge.f32.partialorder %v4375_v25, 0.0 }
 0x1f5   : > { %v1905_v28 = vmul.f32 0.2, %v1798_v27  ;;  %v4376_v29 = vpop.f32.mrb[30].mxu0  ;;  %vm1873_vm13 = vcmp.ge.f32.partialorder %v1798_v27, 0.0 }
 0x1f6   : > { %vm1876_vm14 = vcmp.ge.f32.partialorder %v4376_v29, 0.0  ;;  %v1908_v30 = vmul.f32 0.2, %v4376_v29  ;;  %v1801_v31 = vpop.f32.mrb[31].mxu0  ;;  %v5267_v33 = vsel %vm1875_vm12, %v4375_v25, %v1907_v26 }
 0x1f7   : > { %vm1874_vm15 = vcmp.ge.f32.partialorder %v1801_v31, 0.0  ;;  %v1906_v32 = vmul.f32 0.2, %v1801_v31  ;;  %v1937_v35 = vsel %vm1873_vm13, %v1798_v27, %v1905_v28 }
 0x1f8   : > { %v5269_v34 = vsel %vm1876_vm14, %v4376_v29, %v1908_v30 }
 0x1f9   : > { %v1938_v38 = vsel %vm1874_vm15, %v1801_v31, %v1906_v32  ;;  %v1956_v39 = vpack.c.bf16 %v5269_v34, %v5267_v33 }
 0x1fa   : > { %v5273_v40 = vpack.c.bf16 %v1938_v38, %v1937_v35 }
 0x1fc   : > { %4406 = vmatmul.mubr.bf16.gmra.mrb[12].mxu1 %v5273_v40 }
 0x1fd   : > { %4425 = vmatprep.mubr.bf16.mxu1 %v4948_v41 }
 0x204   : > { %4426 = vmatmul.mubr.bf16.vlgmr.msra.gmra.mrb[0].mxu1 %v5211_v52 }
 0x205   : > { %4429 = vmatprep.mubr.bf16.mxu1 %v5213_v4  ;;  %4442 = vmatpush3.bf16.msra.mxu1 %v4892_v63 }
 0x206   : > { %4443 = vmatprep.subr.bf16.mxu1 %v4893_v42 }
 0x209   : > { %4444 = vmatpush3.bf16.msra.mxu1 %v4893_v42 }
 0x20a   : > { %4445 = vmatprep.subr.bf16.mxu1 %v4894_v43 }
 0x20c   : > { %4430 = vmatmul.mubr.bf16.gmra.mrb[4].mxu1 %v5224_v20 }
 0x20d   : > { %4433 = vmatprep.mubr.bf16.mxu1 %v5235_v36  ;;  %4446 = vmatpush3.bf16.msra.mxu1 %v4894_v43 }
 0x20e   : > { %4447 = vmatprep.subr.bf16.mxu1 %v4895_v44 }
 0x211   : > { %4448 = vmatpush3.bf16.msra.mxu1 %v4895_v44 }
 0x212   : > { %4449 = vmatprep.subr.bf16.mxu1 %v4896_v45 }
 0x214   : > { %4434 = vmatmul.mubr.bf16.gmra.mrb[8].mxu1 %v5246_v53 }
 0x215   : > { %4437 = vmatprep.mubr.bf16.mxu1 %v5257_v7  ;;  %4450 = vmatpush3.bf16.msra.mxu1 %v4896_v45 }
 0x216   : > { %4451 = vmatprep.subr.bf16.mxu1 %v4897_v46 }
 0x219   : > { %4452 = vmatpush3.bf16.msra.mxu1 %v4897_v46 }
 0x21a   : > { %4453 = vmatprep.subr.bf16.mxu1 %v4898_v47 }
 0x21c   : > { %4438 = vmatmul.mubr.bf16.gmra.mrb[12].mxu1 %v5262_v23 }
 0x21d   : > { %4454 = vmatpush3.bf16.msra.mxu1 %v4898_v47  ;;  %4457 = vmatprep.mubr.bf16.mxu1 %v5211_v52  ;;  %v4902_v52 = vld [vmem:[%s5530_s2 + $0xd0] sm:$0xff]  }
 0x21e   : > { %4455 = vmatprep.subr.bf16.mxu1 %v4899_v48 }
 0x221   : > { %4456 = vmatpush3.bf16.msra.mxu1 %v4899_v48 }
 0x222   : > { %4473 = vmatprep.subr.bf16.mxu1 %v4900_v49 }
 0x224   : > { %4458 = vmatmul.mubr.bf16.vlgmr.msra.gmra.mrb[0].mxu1 %v5213_v4  ;;  %v4904_v4 = vld [vmem:[%s5530_s2 + $0xe0] sm:$0xff]  }
 0x225   : > { %4461 = vmatprep.mubr.bf16.mxu1 %v5224_v20  ;;  %4474 = vmatpush3.bf16.msra.mxu1 %v4900_v49  ;;  %v4905_v20 = vld [vmem:[%s5530_s2 + $0xe8] sm:$0xff]  }
 0x226   : > { %4475 = vmatprep.subr.bf16.mxu1 %v4901_v50 }
 0x229   : > { %4476 = vmatpush3.bf16.msra.mxu1 %v4901_v50 }
 0x22a   : > { %4477 = vmatprep.subr.bf16.mxu1 %v4902_v52 }
 0x22c   : > { %4462 = vmatmul.mubr.bf16.gmra.mrb[4].mxu1 %v5235_v36  ;;  %v4906_v36 = vld [vmem:[%s5530_s2 + $0xf0] sm:$0xff]  }
 0x22d   : > { %4465 = vmatprep.mubr.bf16.mxu1 %v5246_v53  ;;  %4478 = vmatpush3.bf16.msra.mxu1 %v4902_v52  ;;  %v4907_v53 = vld [vmem:[%s5530_s2 + $0xf8] sm:$0xff]  }
 0x22e   : > { %4479 = vmatprep.subr.bf16.mxu1 %v4903_v51 }
 0x231   : > { %4480 = vmatpush3.bf16.msra.mxu1 %v4903_v51 }
 0x232   : > { %4481 = vmatprep.subr.bf16.mxu1 %v4904_v4 }
 0x234   : > { %4466 = vmatmul.mubr.bf16.gmra.mrb[8].mxu1 %v5257_v7 }
 0x235   : > { %4469 = vmatprep.mubr.bf16.mxu1 %v5262_v23  ;;  %4482 = vmatpush3.bf16.msra.mxu1 %v4904_v4 }
 0x236   : > { %4483 = vmatprep.subr.bf16.mxu1 %v4905_v20 }
 0x239   : > { %4484 = vmatpush3.bf16.msra.mxu1 %v4905_v20 }
 0x23a   : > { %4485 = vmatprep.subr.bf16.mxu1 %v4906_v36 }
 0x23c   : > { %4470 = vmatmul.mubr.bf16.gmra.mrb[12].mxu1 %v1956_v39 }
 0x23d   : > { %4486 = vmatpush3.bf16.msra.mxu1 %v4906_v36  ;;  %4489 = vmatprep.mubr.bf16.mxu1 %v5215_v5  ;;  %v4910_v5 = vld [vmem:[%s5531_s3 + $0x50] sm:$0xff]  }
 0x23e   : > { %4487 = vmatprep.subr.bf16.mxu1 %v4907_v53 }
 0x241   : > { %4488 = vmatpush3.bf16.msra.mxu1 %v4907_v53 }
 0x242   : > { %4505 = vmatprep.subr.bf16.mxu1 %v4908_v55 }
 0x244   : > { %4490 = vmatmul.mubr.bf16.vlgmr.msra.gmra.mrb[0].mxu1 %v5226_v21  ;;  %v4911_v21 = vld [vmem:[%s5531_s3 + $0x58] sm:$0xff]  }
 0x245   : > { %4493 = vmatprep.mubr.bf16.mxu1 %v5237_v37  ;;  %4506 = vmatpush3.bf16.msra.mxu1 %v4908_v55  ;;  %v4912_v37 = vld [vmem:[%s5531_s3 + $0x60] sm:$0xff]   ;;  %v4917_v55 = vld [vmem:[%s5531_s3 + $0x8] sm:$0xff]  }
 0x246   : > { %4507 = vmatprep.subr.bf16.mxu1 %v4909_v56 }
 0x249   : > { %4508 = vmatpush3.bf16.msra.mxu1 %v4909_v56 }
 0x24a   : > { %4509 = vmatprep.subr.bf16.mxu1 %v4910_v5 }
 0x24c   : > { %4494 = vmatmul.mubr.bf16.gmra.mrb[4].mxu1 %v5248_v54  ;;  %v4913_v54 = vld [vmem:[%s5531_s3 + $0x68] sm:$0xff]  }
 0x24d   : > { %4497 = vmatprep.mubr.bf16.mxu1 %v5259_v8  ;;  %4510 = vmatpush3.bf16.msra.mxu1 %v4910_v5 }
 0x24e   : > { %4511 = vmatprep.subr.bf16.mxu1 %v4911_v21 }
 0x251   : > { %4512 = vmatpush3.bf16.msra.mxu1 %v4911_v21 }
 0x252   : > { %4513 = vmatprep.subr.bf16.mxu1 %v4912_v37 }
 0x254   : > { %4498 = vmatmul.mubr.bf16.gmra.mrb[8].mxu1 %v5264_v24 }
 0x255   : > { %4501 = vmatprep.mubr.bf16.mxu1 %v5273_v40  ;;  %4514 = vmatpush3.bf16.msra.mxu1 %v4912_v37 }
 0x256   : > { %4515 = vmatprep.subr.bf16.mxu1 %v4913_v54 }
 0x259   : > { %4516 = vmatpush3.bf16.msra.mxu1 %v4913_v54 }
 0x25a   : > { %4517 = vmatprep.subr.bf16.mxu1 %v4914_v57 }
 0x25c   : > { %4502 = vmatmul.mubr.bf16.gmra.mrb[12].mxu1 %v4948_v41 }
 0x25d   : > { %4518 = vmatpush3.bf16.msra.mxu1 %v4914_v57 }
 0x25e   : > { %4519 = vmatprep.subr.bf16.mxu1 %v4915_v58 }
 0x261   : > { %4520 = vmatpush3.bf16.msra.mxu1 %v4915_v58 }
 0x262   : > { %4529 = vmatprep.subr.bf16.mxu1 %v5371_v59 }
 0x317   : > { %v4491_v61 = vpop.f32.mrb[0].mxu1 }
 0x318   : > { %v2712_v63 = vmul.f32 %v4491_v61, %v5377_v60  ;;  %v2624_v0 = vpop.f32.mrb[1].mxu1  ;;  %v4918_v61 = vld [vmem:[%s5531_s3 + $0x10] sm:$0xff]  }
 0x319   : > { %v2710_v1 = vmul.f32 %v5377_v60, %v2624_v0  ;;  %v4492_v2 = vpop.f32.mrb[2].mxu1 }
 0x31a   : > { %v2735_v3 = vadd.f32 %v5382_v62, %v2712_v63  ;;  %v2713_v6 = vmul.f32 %v4492_v2, %v5377_v60  ;;  %v2627_v7 = vpop.f32.mrb[3].mxu1 }
 0x31b   : > { %v2733_v8 = vadd.f32 %v5382_v62, %v2710_v1  ;;  %v2711_v9 = vmul.f32 %v5377_v60, %v2627_v7 }
 0x31c   : > { %v2767_v10 = vmul.f32 0.2, %v2735_v3  ;;  %v2736_v11 = vadd.f32 %v5382_v62, %v2713_v6  ;;  %vm2751_vm0 = vcmp.ge.f32.partialorder %v2735_v3, 0.0 }
 0x31d   : > { %v2765_v12 = vmul.f32 0.2, %v2733_v8  ;;  %v2734_v13 = vadd.f32 %v5382_v62, %v2711_v9  ;;  %vm2749_vm1 = vcmp.ge.f32.partialorder %v2733_v8, 0.0 }
 0x31e   : > { %vm2752_vm2 = vcmp.ge.f32.partialorder %v2736_v11, 0.0  ;;  %v2768_v14 = vmul.f32 0.2, %v2736_v11  ;;  %v2783_v17 = vsel %vm2751_vm0, %v2735_v3, %v2767_v10 }
 0x31f   : > { %vm2750_vm3 = vcmp.ge.f32.partialorder %v2734_v13, 0.0  ;;  %v2766_v15 = vmul.f32 0.2, %v2734_v13  ;;  %v4495_v16 = vpop.f32.mrb[4].mxu1  ;;  %v2781_v26 = vsel %vm2749_vm1, %v2733_v8, %v2765_v12 }
 0x320   : > { %v2784_v18 = vsel %vm2752_vm2, %v2736_v11, %v2768_v14  ;;  %v2716_v19 = vmul.f32 %v4495_v16, %v5377_v60  ;;  %v2640_v22 = vpop.f32.mrb[5].mxu1 }
 0x321   : > { %v5393_v23 = vpack.c.bf16 %v2784_v18, %v2783_v17  ;;  %v2714_v24 = vmul.f32 %v5377_v60, %v2640_v22  ;;  %v4496_v25 = vpop.f32.mrb[6].mxu1  ;;  %v2782_v27 = vsel %vm2750_vm3, %v2734_v13, %v2766_v15  ;;  %v4919_v15 = vld [vmem:[%s5531_s3 + $0x18] sm:$0xff]  }
 0x322   : > { %v2739_v28 = vadd.f32 %v5382_v62, %v2716_v19  ;;  %v2717_v29 = vmul.f32 %v4496_v25, %v5377_v60  ;;  %v2643_v30 = vpop.f32.mrb[7].mxu1  ;;  %v2797_v31 = vpack.c.bf16 %v2782_v27, %v2781_v26  ;;  %v4920_v26 = vld [vmem:[%s5531_s3 + $0x20] sm:$0xff]  }
 0x323   : > { %v2737_v32 = vadd.f32 %v5382_v62, %v2714_v24  ;;  %v2715_v33 = vmul.f32 %v5377_v60, %v2643_v30 }
 0x324   : > { %v2771_v34 = vmul.f32 0.2, %v2739_v28  ;;  %v2740_v35 = vadd.f32 %v5382_v62, %v2717_v29  ;;  %4521 = vmatprep.mubr.bf16.mxu1 %v2797_v31  ;;  %vm2755_vm4 = vcmp.ge.f32.partialorder %v2739_v28, 0.0 }
 0x325   : > { %v2769_v38 = vmul.f32 0.2, %v2737_v32  ;;  %v2738_v39 = vadd.f32 %v5382_v62, %v2715_v33  ;;  %vm2753_vm5 = vcmp.ge.f32.partialorder %v2737_v32, 0.0  ;;  %v4922_v33 = vld [vmem:[%s5531_s3 + $0x30] sm:$0xff]  }
 0x326   : > { %vm2756_vm6 = vcmp.ge.f32.partialorder %v2740_v35, 0.0  ;;  %v2772_v40 = vmul.f32 0.2, %v2740_v35  ;;  %v2787_v46 = vsel %vm2755_vm4, %v2739_v28, %v2771_v34  ;;  %v4923_v34 = vld [vmem:[%s5531_s3 + $0x38] sm:$0xff]  }
 0x327   : > { %vm2754_vm7 = vcmp.ge.f32.partialorder %v2738_v39, 0.0  ;;  %v2770_v42 = vmul.f32 0.2, %v2738_v39  ;;  %v4499_v43 = vpop.f32.mrb[8].mxu1  ;;  %v2785_v48 = vsel %vm2753_vm5, %v2737_v32, %v2769_v38  ;;  %v4925_v38 = vld [vmem:[%s5531_s3 + $0x88] sm:$0xff]  }
 0x328   : > { %v2720_v44 = vmul.f32 %v4499_v43, %v5377_v60  ;;  %v2656_v45 = vpop.f32.mrb[9].mxu1  ;;  %v2788_v47 = vsel %vm2756_vm6, %v2740_v35, %v2772_v40  ;;  %v4924_v35 = vld [vmem:[%s5531_s3 + $0x80] sm:$0xff]   ;;  %v4927_v40 = vld [vmem:[%s5531_s3 + $0x98] sm:$0xff]   ;;  %v4929_v43 = vld [vmem:[%s5531_s3 + $0xa8] sm:$0xff]  }
 0x329   : > { %v2786_v49 = vsel %vm2754_vm7, %v2738_v39, %v2770_v42  ;;  %v2718_v50 = vmul.f32 %v5377_v60, %v2656_v45  ;;  %v4500_v52 = vpop.f32.mrb[10].mxu1  ;;  %v5404_v51 = vpack.c.bf16 %v2788_v47, %v2787_v46  ;;  %v4926_v39 = vld [vmem:[%s5531_s3 + $0x90] sm:$0xff]   ;;  %v4928_v42 = vld [vmem:[%s5531_s3 + $0xa0] sm:$0xff]   ;;  %v4933_v46 = vld [vmem:[%s5531_s3 + $0xc8] sm:$0xff]  }
 0x32a   : > { %v5406_v4 = vpack.c.bf16 %v2786_v49, %v2785_v48  ;;  %v2743_v20 = vadd.f32 %v5382_v62, %v2720_v44  ;;  %v2721_v36 = vmul.f32 %v4500_v52, %v5377_v60  ;;  %v2659_v53 = vpop.f32.mrb[11].mxu1  ;;  %v4930_v44 = vld [vmem:[%s5531_s3 + $0xb0] sm:$0xff]   ;;  %v4932_v45 = vld [vmem:[%s5531_s3 + $0xc0] sm:$0xff]   ;;  %v4935_v48 = vld [vmem:[%s5531_s3 + $0xd8] sm:$0xff]  }
 0x32b   : > { %v2741_v56 = vadd.f32 %v5382_v62, %v2718_v50  ;;  %v2719_v5 = vmul.f32 %v5377_v60, %v2659_v53  ;;  %v4934_v47 = vld [vmem:[%s5531_s3 + $0xd0] sm:$0xff]   ;;  %v4936_v49 = vld [vmem:[%s5531_s3 + $0xe0] sm:$0xff]   ;;  %v4937_v50 = vld [vmem:[%s5531_s3 + $0xe8] sm:$0xff]  }
 0x32c   : > { %v2775_v21 = vmul.f32 0.2, %v2743_v20  ;;  %v2744_v37 = vadd.f32 %v5382_v62, %v2721_v36  ;;  %4522 = vmatmul.mubr.bf16.vlgmr.msra.gmra.mrb[16].mxu1 %v5406_v4  ;;  %vm2759_vm8 = vcmp.ge.f32.partialorder %v2743_v20, 0.0  ;;  %v4938_v52 = vld [vmem:[%s5531_s3 + $0xf0] sm:$0xff]   ;;  %v3442_v36 = vlaneseq }
 0x32d   : > { %v2773_v54 = vmul.f32 0.2, %v2741_v56  ;;  %v2742_v57 = vadd.f32 %v5382_v62, %v2719_v5  ;;  %4530 = vmatpush3.bf16.msra.mxu1 %v5371_v59  ;;  %vm2757_vm9 = vcmp.ge.f32.partialorder %v2741_v56, 0.0 }
 0x32e   : > { %vm2760_vm10 = vcmp.ge.f32.partialorder %v2744_v37, 0.0  ;;  %v2776_v58 = vmul.f32 0.2, %v2744_v37  ;;  %4531 = vmatprep.subr.bf16.mxu1 %v4917_v55  ;;  %v2791_v3 = vsel %vm2759_vm8, %v2743_v20, %v2775_v21  ;;  %vm3502_vm8 = vcmask 7168  }
 0x32f   : > { %vm2758_vm11 = vcmp.ge.f32.partialorder %v2742_v57, 0.0  ;;  %v2774_v63 = vmul.f32 0.2, %v2742_v57  ;;  %v4503_v0 = vpop.f32.mrb[12].mxu1  ;;  %v2789_v8 = vsel %vm2757_vm9, %v2741_v56, %v2773_v54 }
 0x330   : > { %v2724_v1 = vmul.f32 %v4503_v0, %v5377_v60  ;;  %v2672_v2 = vpop.f32.mrb[13].mxu1  ;;  %v2792_v6 = vsel %vm2760_vm10, %v2744_v37, %v2776_v58  ;;  %v3972_v56 = vld.sshfl [vmem:[%s5536_s8] sm:$0x33 pattern:$0x75316420] }
 0x331   : > { %v2722_v7 = vmul.f32 %v5377_v60, %v2672_v2  ;;  %4532 = vmatpush3.bf16.msra.mxu1 %v4917_v55  ;;  %v4504_v59 = vpop.f32.mrb[14].mxu1  ;;  %v2790_v9 = vsel %vm2758_vm11, %v2742_v57, %v2774_v63  ;;  %v5424_v10 = vpack.c.bf16 %v2792_v6, %v2791_v3  ;;  %v3443_v55 = vshrl.u32 %v3442_v36, 7  ;;  %v3970_v37 = vld [vmem:[%s5534_s6] ss:$0 sm:$0xff] }
 0x332   : > { %v2747_v11 = vadd.f32 %v5382_v62, %v2724_v1  ;;  %v2725_v12 = vmul.f32 %v4504_v59, %v5377_v60  ;;  %v2675_v13 = vpop.f32.mrb[15].mxu1  ;;  %4533 = vmatprep.subr.bf16.mxu1 %v4918_v61  ;;  %v5428_v14 = vpack.c.bf16 %v2790_v9, %v2789_v8  ;;  %v3438_v5 = vcombine.high %v3972_v56, %v3972_v56 }
 0x333   : > { %v2745_v16 = vadd.f32 %v5382_v62, %v2722_v7  ;;  %v2723_v17 = vmul.f32 %v5377_v60, %v2675_v13  ;;  %v3457_v58 = vsub.s32 0, %v3443_v55 }
 0x334   : > { %v2779_v18 = vmul.f32 0.2, %v2747_v11  ;;  %v2748_v19 = vadd.f32 %v5382_v62, %v2725_v12  ;;  %4525 = vmatprep.mubr.bf16.mxu1 %v5428_v14  ;;  %vm2763_vm12 = vcmp.ge.f32.partialorder %v2747_v11, 0.0 }
 0x335   : > { %v2777_v22 = vmul.f32 0.2, %v2745_v16  ;;  %v2746_v24 = vadd.f32 %v5382_v62, %v2723_v17  ;;  %4534 = vmatpush3.bf16.msra.mxu1 %v4918_v61  ;;  %vm2761_vm13 = vcmp.ge.f32.partialorder %v2745_v16, 0.0  ;;  %v4921_v62 = vld [vmem:[%s5531_s3 + $0x28] sm:$0xff]  }
 0x336   : > { %vm2764_vm14 = vcmp.ge.f32.partialorder %v2748_v19, 0.0  ;;  %v2780_v25 = vmul.f32 0.2, %v2748_v19  ;;  %4535 = vmatprep.subr.bf16.mxu1 %v4919_v15  ;;  %v2795_v27 = vsel %vm2763_vm12, %v2747_v11, %v2779_v18 }
 0x337   : > { %vm2762_vm15 = vcmp.ge.f32.partialorder %v2746_v24, 0.0  ;;  %v2778_v60 = vmul.f32 0.2, %v2746_v24  ;;  %v2793_v29 = vsel %vm2761_vm13, %v2745_v16, %v2777_v22 }
 0x338   : > { %v2796_v28 = vsel %vm2764_vm14, %v2748_v19, %v2780_v25 }
 0x339   : > { %4536 = vmatpush3.bf16.msra.mxu1 %v4919_v15  ;;  %v2794_v30 = vsel %vm2762_vm15, %v2746_v24, %v2778_v60  ;;  %v2804_v31 = vpack.c.bf16 %v2796_v28, %v2795_v27 }
 0x33a   : > { %4537 = vmatprep.subr.bf16.mxu1 %v4920_v26  ;;  %v5441_v32 = vpack.c.bf16 %v2794_v30, %v2793_v29 }
 0x33c   : > { %4526 = vmatmul.mubr.bf16.gmra.mrb[20].mxu1 %v5441_v32 }
 0x33d   : > { %4538 = vmatpush3.bf16.msra.mxu1 %v4920_v26  ;;  %4545 = vmatprep.mubr.bf16.mxu1 %v4948_v41 }
 0x33e   : > { %4539 = vmatprep.subr.bf16.mxu1 %v4921_v62 }
 0x341   : > { %4540 = vmatpush3.bf16.msra.mxu1 %v4921_v62 }
 0x342   : > { %4541 = vmatprep.subr.bf16.mxu1 %v4922_v33 }
 0x345   : > { %4542 = vmatpush3.bf16.msra.mxu1 %v4922_v33 }
 0x346   : > { %4543 = vmatprep.subr.bf16.mxu1 %v4923_v34 }
 0x349   : > { %4544 = vmatpush3.bf16.msra.mxu1 %v4923_v34 }
 0x34a   : > { %4553 = vmatprep.subr.bf16.mxu1 %v4924_v35 }
 0x34c   : > { %4546 = vmatmul.mubr.bf16.vlgmr.msra.gmra.mrb[16].mxu1 %v5393_v23 }
 0x34d   : > { %4549 = vmatprep.mubr.bf16.mxu1 %v5404_v51  ;;  %4554 = vmatpush3.bf16.msra.mxu1 %v4924_v35 }
 0x34e   : > { %4555 = vmatprep.subr.bf16.mxu1 %v4925_v38 }
 0x351   : > { %4556 = vmatpush3.bf16.msra.mxu1 %v4925_v38 }
 0x352   : > { %4557 = vmatprep.subr.bf16.mxu1 %v4926_v39 }
 0x354   : > { %4550 = vmatmul.mubr.bf16.gmra.mrb[20].mxu1 %v5424_v10 }
 0x355   : > { %4558 = vmatpush3.bf16.msra.mxu1 %v4926_v39  ;;  %4569 = vmatprep.mubr.bf16.mxu1 %v5393_v23  ;;  %v4931_v23 = vld [vmem:[%s5531_s3 + $0xb8] sm:$0xff]  }
 0x356   : > { %4559 = vmatprep.subr.bf16.mxu1 %v4927_v40 }
 0x359   : > { %4560 = vmatpush3.bf16.msra.mxu1 %v4927_v40 }
 0x35a   : > { %4561 = vmatprep.subr.bf16.mxu1 %v4928_v42 }
 0x35d   : > { %4562 = vmatpush3.bf16.msra.mxu1 %v4928_v42 }
 0x35e   : > { %4563 = vmatprep.subr.bf16.mxu1 %v4929_v43 }
 0x361   : > { %4564 = vmatpush3.bf16.msra.mxu1 %v4929_v43 }
 0x362   : > { %4565 = vmatprep.subr.bf16.mxu1 %v4930_v44 }
 0x365   : > { %4566 = vmatpush3.bf16.msra.mxu1 %v4930_v44 }
 0x366   : > { %4567 = vmatprep.subr.bf16.mxu1 %v4931_v23 }
 0x369   : > { %4568 = vmatpush3.bf16.msra.mxu1 %v4931_v23 }
 0x36a   : > { %4577 = vmatprep.subr.bf16.mxu1 %v4932_v45 }
 0x36c   : > { %4570 = vmatmul.mubr.bf16.vlgmr.msra.gmra.mrb[16].mxu1 %v5404_v51  ;;  %v4939_v51 = vld [vmem:[%s5531_s3 + $0xf8] sm:$0xff]  }
 0x36d   : > { %4573 = vmatprep.mubr.bf16.mxu1 %v5424_v10  ;;  %4578 = vmatpush3.bf16.msra.mxu1 %v4932_v45 }
 0x36e   : > { %4579 = vmatprep.subr.bf16.mxu1 %v4933_v46 }
 0x371   : > { %4580 = vmatpush3.bf16.msra.mxu1 %v4933_v46 }
 0x372   : > { %4581 = vmatprep.subr.bf16.mxu1 %v4934_v47 }
 0x374   : > { %4574 = vmatmul.mubr.bf16.gmra.mrb[20].mxu1 %v2804_v31 }
 0x375   : > { %4582 = vmatpush3.bf16.msra.mxu1 %v4934_v47  ;;  %4593 = vmatprep.mubr.bf16.mxu1 %v5406_v4  ;;  %v4949_v4 = vmov 1966171168  }
 0x376   : > { %4583 = vmatprep.subr.bf16.mxu1 %v4935_v48  ;;  %v3440_v20 = vunpack.c.l.s4 %v4949_v4 }
 0x378   : > { %v3441_v53 = vunpack.c.0.s8 %v3440_v20 }
 0x379   : > { %4584 = vmatpush3.bf16.msra.mxu1 %v4935_v48 }
 0x37a   : > { %4585 = vmatprep.subr.bf16.mxu1 %v4936_v49  ;;  %v3444_v21 = vsub.s32 %v3441_v53, %v3443_v55 }
 0x37c   : > { %v3452_v57 = vrot.slane %v3438_v5, %v3444_v21  ;;  %v3445_v0 = vrot.slane %v3972_v56, %v3444_v21 }
 0x37d   : > { %4586 = vmatpush3.bf16.msra.mxu1 %v4936_v49 }
 0x37e   : > { %4587 = vmatprep.subr.bf16.mxu1 %v4937_v50  ;;  %v3462_v9 = vrot.slane %v3452_v57, %v3457_v58  ;;  %v3458_v12 = vrot.slane %v3445_v0, %v3457_v58  ;;  %v3453_v17 = vcombine.high %v3445_v0, %v3445_v0  ;;  %v3454_v31 = vcombine.high %v3452_v57, %v3452_v57 }
 0x380   : > { %v3466_v42 = vrot.slane %v3453_v17, %v3457_v58  ;;  %v3470_v48 = vrot.slane %v3454_v31, %v3457_v58 }
 0x381   : > { %4588 = vmatpush3.bf16.msra.mxu1 %v4937_v50 }
 0x382   : > { %4589 = vmatprep.subr.bf16.mxu1 %v4938_v52 }
 0x385   : > { %4590 = vmatpush3.bf16.msra.mxu1 %v4938_v52 }
 0x386   : > { %4591 = vmatprep.subr.bf16.mxu1 %v4939_v51 }
 0x389   : > { %4592 = vmatpush3.bf16.msra.mxu1 %v4939_v51 }
 0x38c   : > { %4594 = vmatmul.mubr.bf16.vlgmr.msra.gmra.mrb[16].mxu1 %v5428_v14 }
 0x38d   : > { %4597 = vmatprep.mubr.bf16.mxu1 %v5441_v32 }
 0x394   : > { %4598 = vmatmul.mubr.bf16.gmra.mrb[20].mxu1 %v4948_v41  ;;  %v3971_v41 = vld [vmem:[%s5535_s7] ss:$0 sm:$0xff] }
 0x45f   : > { %v4595_v54 = vpop.f32.mrb[16].mxu1 }
 0x460   : > { %v3384_v61 = vmul.f32 %v4595_v54, %v3970_v37  ;;  %v3336_v63 = vpop.f32.mrb[17].mxu1  ;;  %v3973_v54 = vld [vmem:[#allocation4] ss:$0 sm:$0xff] }
 0x461   : > { %v3382_v1 = vmul.f32 %v3970_v37, %v3336_v63  ;;  %v4596_v2 = vpop.f32.mrb[18].mxu1 }
 0x462   : > { %v3399_v3 = vadd.f32 %v3971_v41, %v3384_v61  ;;  %v3385_v6 = vmul.f32 %v4596_v2, %v3970_v37  ;;  %v3339_v7 = vpop.f32.mrb[19].mxu1 }
 0x463   : > { %v3397_v59 = vadd.f32 %v3971_v41, %v3382_v1  ;;  %v3383_v8 = vmul.f32 %v3970_v37, %v3339_v7 }
 0x464   : > { %vm3407_vm0 = vcmp.ge.f32.partialorder %v3399_v3, 0.0  ;;  %v3415_v10 = vmul.f32 0.2, %v3399_v3  ;;  %v3400_v11 = vadd.f32 %v3971_v41, %v3385_v6 }
 0x465   : > { %vm3405_vm1 = vcmp.ge.f32.partialorder %v3397_v59, 0.0  ;;  %v3413_v13 = vmul.f32 0.2, %v3397_v59  ;;  %v3398_v14 = vadd.f32 %v3971_v41, %v3383_v8 }
 0x466   : > { %vm3408_vm2 = vcmp.ge.f32.partialorder %v3400_v11, 0.0  ;;  %v3416_v15 = vmul.f32 0.2, %v3400_v11  ;;  %v3423_v16 = vsel %vm3407_vm0, %v3399_v3, %v3415_v10 }
 0x467   : > { %vm3406_vm3 = vcmp.ge.f32.partialorder %v3398_v14, 0.0  ;;  %v3414_v18 = vmul.f32 0.2, %v3398_v14  ;;  %v4599_v19 = vpop.f32.mrb[20].mxu1  ;;  %v3421_v22 = vsel %vm3405_vm1, %v3397_v59, %v3413_v13  ;;  %v3477_v24 = vmul.f32 %v3462_v9, %v3423_v16 }
 0x468   : > { %v3424_v25 = vsel %vm3408_vm2, %v3400_v11, %v3416_v15  ;;  %v3388_v26 = vmul.f32 %v4599_v19, %v3970_v37  ;;  %v3352_v60 = vpop.f32.mrb[21].mxu1  ;;  %v3475_v27 = vmul.f32 %v3458_v12, %v3421_v22 }
 0x469   : > { %v3422_v28 = vsel %vm3406_vm3, %v3398_v14, %v3414_v18  ;;  %v3386_v29 = vmul.f32 %v3970_v37, %v3352_v60  ;;  %v4600_v30 = vpop.f32.mrb[22].mxu1  ;;  %v3478_v32 = vmul.f32 %v3462_v9, %v3424_v25 }
 0x46a   : > { %v3403_v62 = vadd.f32 %v3971_v41, %v3388_v26  ;;  %v3389_v33 = vmul.f32 %v4600_v30, %v3970_v37  ;;  %v3355_v34 = vpop.f32.mrb[23].mxu1  ;;  %v3483_v35 = vadd.f32 %v3477_v24, %v3475_v27  ;;  %v3476_v38 = vmul.f32 %v3458_v12, %v3422_v28 }
 0x46b   : > { %v3401_v39 = vadd.f32 %v3971_v41, %v3386_v29  ;;  %v3387_v40 = vmul.f32 %v3970_v37, %v3355_v34 }
 0x46c   : > { %v3419_v43 = vmul.f32 0.2, %v3403_v62  ;;  %v3404_v44 = vadd.f32 %v3971_v41, %v3389_v33  ;;  %vm3411_vm4 = vcmp.ge.f32.partialorder %v3403_v62, 0.0  ;;  %v3486_v23 = vadd.f32 %v3478_v32, %v3476_v38 }
 0x46d   : > { %vm3409_vm5 = vcmp.ge.f32.partialorder %v3401_v39, 0.0  ;;  %v3417_v45 = vmul.f32 0.2, %v3401_v39  ;;  %v3402_v46 = vadd.f32 %v3971_v41, %v3387_v40 }
 0x46e   : > { %v3420_v47 = vmul.f32 0.2, %v3404_v44  ;;  %vm3412_vm6 = vcmp.ge.f32.partialorder %v3404_v44, 0.0  ;;  %v3427_v52 = vsel %vm3411_vm4, %v3403_v62, %v3419_v43 }
 0x46f   : > { %vm3410_vm7 = vcmp.ge.f32.partialorder %v3402_v46, 0.0  ;;  %v3418_v49 = vmul.f32 0.2, %v3402_v46  ;;  %v3425_v50 = vsel %vm3409_vm5, %v3401_v39, %v3417_v45  ;;  %v3481_v36 = vmul.f32 %v3470_v48, %v3427_v52 }
 0x470   : > { %v3479_v51 = vmul.f32 %v3466_v42, %v3425_v50  ;;  %v3428_v20 = vsel %vm3412_vm6, %v3404_v44, %v3420_v47 }
 0x471   : > { %v3426_v4 = vsel %vm3410_vm7, %v3402_v46, %v3418_v49  ;;  %v3482_v5 = vmul.f32 %v3470_v48, %v3428_v20 }
 0x472   : > { %v3484_v53 = vadd.f32 %v3483_v35, %v3479_v51  ;;  %v3480_v55 = vmul.f32 %v3466_v42, %v3426_v4 }
 0x474   : > { %v3485_v56 = vadd.f32 %v3484_v53, %v3481_v36  ;;  %v3487_v21 = vadd.f32 %v3486_v23, %v3480_v55 }
 0x476   : > { %3489 = vadd.xlane.f32.xlu0 %v3485_v56  ;;  %v3488_v37 = vadd.f32 %v3487_v21, %v3482_v5 }
 0x47a   : > { %3491 = vadd.xlane.f32.xlu0 %v3488_v37 }
 0x503   : > { %v3490_v41 = vpop.xlane.xlu0 %3489 }
 0x504   : > { %v3500_v57 = vadd.f32 %v3973_v54, %v3490_v41 }
 0x506   : > { %3503 = vst.msk [vmem:[%s361_s19] sm:$0xff] %vm3502_vm8, %v3500_v57 }
 0x507   : > { %v3492_v58 = vpop.xlane.xlu0 %3491 }
 0x508   : > { %v3501_v61 = vadd.f32 %v3973_v54, %v3492_v58 }
 0x50a   : > { %3504 = vst.msk [vmem:[%s361_s19 + $0x8] sm:$0xff] %vm3502_vm8, %v3501_v61 }
 0x50b PF: > { %s22_s15 = sadd.s32 1, %s4946_s15  }
 0x50c   : > { %p19_p4 = scmp.ge.s32.totalorder %s22_s15, 4  }
 0x50e   :  { %21 = sbr.rel (!%p19_p4) target bundleno = 3 (0x3), region = 128 }

</bundles_post_ra>
